<compile_context>
chip_gen: v7x
topology: tpu7x:2x2x1
jax: 0.10.0
libtpu: 0.0.40
codegen_flags: <defaults>
</compile_context>

<pallas_src>
import jax
import jax.numpy as jnp
from jax.experimental import pallas as pl
from jax.experimental.pallas import tpu as pltpu


def _round_up(x, m):
    return (x + m - 1) // m * m


def _pick_tiling():
    """Generation-aware (batch tile, scoped VMEM limit).

    v7x   : 64 MiB physical VMEM per TC  -> TB=2048, ~48 MiB scoped limit.
    v5e/v6e: 128 MiB physical VMEM       -> TB=4096, ~96 MiB scoped limit.
    Streamed f32 wt+mut double-buffered cost ~12 KiB per batch row.
    """
    vmem_bytes = 64 * 1024 * 1024           # conservative default (v7x-sized)
    try:
        vmem_bytes = pltpu.get_tpu_info().vmem_capacity_bytes
    except Exception:
        pass
    if vmem_bytes >= 100 * 1024 * 1024:      # v5e / v6e (128 MiB VMEM)
        return 4096, 96 * 1024 * 1024
    return 2048, 48 * 1024 * 1024            # v7x (64 MiB VMEM per TC)


def mlp_kernel(wt_ref, mut_ref,
               w1_ref, b1_ref,
               w2_ref, b2_ref,
               w3_ref, b3_ref,
               o_ref):
    neg_slope = 0.01

    # m = diff: x = mut - wt, in f32 exactly as stored in HBM, then a single cast
    # to bf16 for the MXU (no wrapper-side convert pass over the big arrays).
    x = (mut_ref[...] - wt_ref[...]).astype(jnp.bfloat16)

    # input block: Linear(768 -> 256) + LeakyReLU   (dropout = identity in eval)
    h = jnp.dot(x, w1_ref[...], preferred_element_type=jnp.float32) + b1_ref[...]
    h = jnp.maximum(h, neg_slope * h)

    # hidden block: Linear(256 -> 256) + LeakyReLU  (input-block BN folded into w2/b2)
    h = jnp.dot(h.astype(jnp.bfloat16), w2_ref[...],
                preferred_element_type=jnp.float32) + b2_ref[...]
    h = jnp.maximum(h, neg_slope * h)

    # out: Linear(256 -> 1) as VPU multiply + lane reduction (hidden-block BN folded
    # into w3/b3); avoids an N=1 matmul that wastes 255/256 MXU columns.
    o_ref[...] = jnp.sum(h * w3_ref[...], axis=-1, keepdims=True) + b3_ref[...]


def _build_call(B, IN, H, TB, vmem_limit_bytes, single_buffer_weights):
    def resident(shape):
        idx = lambda i, _s=shape: (0,) * len(_s)
        if single_buffer_weights:
            # constant index_map -> single buffer is enough; saves VMEM on v7x
            return pl.BlockSpec(shape, idx, pipeline_mode=pl.Buffered(1))
        return pl.BlockSpec(shape, idx)

    return pl.pallas_call(
        mlp_kernel,
        out_shape=jax.ShapeDtypeStruct((B, 1), jnp.float32),
        grid=(pl.cdiv(B, TB),),                          # ragged last block, no padding
        in_specs=[
            pl.BlockSpec((TB, IN), lambda i: (i, 0)),    # wt  (f32, streamed)
            pl.BlockSpec((TB, IN), lambda i: (i, 0)),    # mut (f32, streamed)
            resident((IN, H)),                           # w1  (bf16, resident)
            resident((1, H)),                            # b1  (f32, resident)
            resident((H, H)),                            # w2' (bf16, BN folded)
            resident((1, H)),                            # b2' (f32)
            resident((1, H)),                            # w3' row (f32)
            resident((1, 1)),                            # b3' (f32)
        ],
        out_specs=pl.BlockSpec((TB, 1), lambda i: (i, 0)),
        compiler_params=pltpu.CompilerParams(
            dimension_semantics=("parallel",),           # megacore-shard batch axis
            vmem_limit_bytes=vmem_limit_bytes,
        ),
    )


def mlp_forward(wt, mut, params, tb=None, vmem_limit_bytes=None):
    """params = (w1_bf16, b1, w2_folded_bf16, b2_folded, w3_row_folded, b3_folded)."""
    w1, b1, w2, b2, w3_row, b3 = params
    B, IN = wt.shape
    H = w1.shape[1]

    auto_tb, auto_vmem = _pick_tiling()
    if tb is None:
        tb = auto_tb
    if vmem_limit_bytes is None:
        vmem_limit_bytes = auto_vmem

    # batch tile: multiple of 8 sublanes; capped so small batches run as 1 tile
    TB = min(tb, _round_up(B, 8))

    args = (wt, mut, w1, b1, w2, b2, w3_row, b3)
    try:
        out = _build_call(B, IN, H, TB, vmem_limit_bytes, True)(*args)
    except Exception:
        # older jax without BlockSpec.pipeline_mode / pl.Buffered: plain specs
        out = _build_call(B, IN, H, TB, vmem_limit_bytes, False)(*args)
    return out  # shape (B, 1); ragged-tail rows never written past B


def init_params(key, in_shape=768, hidden_dim=256, out_shape=1):
    """Deterministic synthetic params matching the PyTorch module (eval mode),
    with the BatchNorm affine folded into the downstream Linear layers and the
    matmul weights pre-cast to bf16 once at init."""
    eps = 1e-5
    keys = jax.random.split(key, 6)

    def linear(kw, kb, fan_in, fan_out):
        bound = 1.0 / jnp.sqrt(fan_in)
        # stored already transposed: (in, out)
        w = jax.random.uniform(kw, (fan_in, fan_out), jnp.float32, -bound, bound)
        b = jax.random.uniform(kb, (1, fan_out), jnp.float32, -bound, bound)
        return w, b

    w1, b1 = linear(keys[0], keys[1], in_shape, hidden_dim)
    w2, b2 = linear(keys[2], keys[3], hidden_dim, hidden_dim)
    w3, b3 = linear(keys[4], keys[5], hidden_dim, out_shape)

    # BatchNorm1d freshly initialized: gamma=1, beta=0, running_mean=0, running_var=1
    gamma = jnp.ones((hidden_dim,), jnp.float32)
    beta = jnp.zeros((hidden_dim,), jnp.float32)
    rmean = jnp.zeros((hidden_dim,), jnp.float32)
    rvar = jnp.ones((hidden_dim,), jnp.float32)
    s = gamma / jnp.sqrt(rvar + eps)     # per-feature scale
    t = beta - rmean * s                 # per-feature shift

    # Fold BN-eval affine into the downstream Linear (bit-identical math):
    #   (h*s + t) @ W + b  ==  h @ (diag(s) @ W) + (t @ W + b)
    w2f = s[:, None] * w2
    b2f = t[None, :] @ w2 + b2
    w3f = s[:, None] * w3
    b3f = t[None, :] @ w3 + b3

    # final Linear(H -> 1) kept as a (1, H) row for the VPU-reduce path
    w3_row = w3f.T                       # (1, hidden_dim), f32
    b3r = b3f.reshape(1, out_shape)      # (1, 1), f32

    return (w1.astype(jnp.bfloat16), b1,
            w2f.astype(jnp.bfloat16), b2f,
            w3_row, b3r)


if __name__ == "__main__":
    # shapes consistent with the module defaults: in=768, hidden=256, out=1; small batch
    B, IN, HID, OUT = 8, 768, 256, 1

    key = jax.random.PRNGKey(0)
    k_wt, k_mut, k_params = jax.random.split(key, 3)
    wt = jax.random.normal(k_wt, (B, IN), jnp.float32)
    mut = jax.random.normal(k_mut, (B, IN), jnp.float32)

    params = init_params(k_params, IN, HID, OUT)

    out = mlp_forward(wt, mut, params)
    jax.block_until_ready(out)
    assert out.shape == (B, OUT), out.shape
    assert bool(jnp.all(jnp.isfinite(out)))
    print("KERNEL_OK")
</pallas_src>

<mosaic_0001>
module attributes {stable_mosaic.version = 11 : i64} {
  func.func @mlp_kernel(%arg0: i32, %arg1: memref<8x768xf32, #tpu.memory_space<vmem>>, %arg2: memref<8x768xf32, #tpu.memory_space<vmem>>, %arg3: memref<768x256xbf16, #tpu.memory_space<vmem>>, %arg4: memref<1x256xf32, #tpu.memory_space<vmem>>, %arg5: memref<256x256xbf16, #tpu.memory_space<vmem>>, %arg6: memref<1x256xf32, #tpu.memory_space<vmem>>, %arg7: memref<1x256xf32, #tpu.memory_space<vmem>>, %arg8: memref<1x1xf32, #tpu.memory_space<vmem>>, %arg9: memref<8x1xf32, #tpu.memory_space<vmem>>) attributes {dimension_semantics = [#tpu.dimension_semantics<parallel>], iteration_bounds = array<i64: 1>, scalar_prefetch = 0 : i64, scratch_operands = 0 : i64, tpu.core_type = #tpu.core_type<tc>, window_params = [{transform_indices = @transform_0, window_bounds = array<i64: 8, 768>}, {transform_indices = @transform_1, window_bounds = array<i64: 8, 768>}, {pipeline_mode = #tpu.pipeline_mode<synchronous>, transform_indices = @transform_2, window_bounds = array<i64: 768, 256>}, {pipeline_mode = #tpu.pipeline_mode<synchronous>, transform_indices = @transform_3, window_bounds = array<i64: 1, 256>}, {pipeline_mode = #tpu.pipeline_mode<synchronous>, transform_indices = @transform_4, window_bounds = array<i64: 256, 256>}, {pipeline_mode = #tpu.pipeline_mode<synchronous>, transform_indices = @transform_5, window_bounds = array<i64: 1, 256>}, {pipeline_mode = #tpu.pipeline_mode<synchronous>, transform_indices = @transform_6, window_bounds = array<i64: 1, 256>}, {pipeline_mode = #tpu.pipeline_mode<synchronous>, transform_indices = @transform_7, window_bounds = array<i64: 1, 1>}, {transform_indices = @transform_8, window_bounds = array<i64: 8, 1>}]} {
    %c0 = arith.constant 0 : index
    %c0_0 = arith.constant 0 : index
    %0 = vector.load %arg2[%c0, %c0_0] : memref<8x768xf32, #tpu.memory_space<vmem>>, vector<8x768xf32>
    %c0_1 = arith.constant 0 : index
    %c0_2 = arith.constant 0 : index
    %1 = vector.load %arg1[%c0_1, %c0_2] : memref<8x768xf32, #tpu.memory_space<vmem>>, vector<8x768xf32>
    %2 = arith.subf %0, %1 : vector<8x768xf32>
    %3 = arith.truncf %2 : vector<8x768xf32> to vector<8x768xbf16>
    %c0_3 = arith.constant 0 : index
    %c0_4 = arith.constant 0 : index
    %4 = vector.load %arg3[%c0_3, %c0_4] : memref<768x256xbf16, #tpu.memory_space<vmem>>, vector<768x256xbf16>
    %cst = arith.constant dense<0.000000e+00> : vector<8x256xf32>
    %5 = tpu.matmul %3, %4, %cst {dimension_numbers = #tpu.dot_dimension_numbers<[1], [0], [0], [1], [0, 0, 1, 1], [], []>} : vector<8x768xbf16>, vector<768x256xbf16>, vector<8x256xf32> -> vector<8x256xf32>
    %c0_5 = arith.constant 0 : index
    %c0_6 = arith.constant 0 : index
    %6 = vector.load %arg4[%c0_5, %c0_6] : memref<1x256xf32, #tpu.memory_space<vmem>>, vector<1x256xf32>
    %7 = vector.broadcast %6 : vector<1x256xf32> to vector<8x256xf32>
    %8 = arith.addf %5, %7 : vector<8x256xf32>
    %cst_7 = arith.constant 0.00999999977 : f32
    %9 = vector.broadcast %cst_7 : f32 to vector<8x256xf32>
    %10 = arith.mulf %9, %8 : vector<8x256xf32>
    %11 = arith.maximumf %8, %10 : vector<8x256xf32>
    %12 = arith.truncf %11 : vector<8x256xf32> to vector<8x256xbf16>
    %c0_8 = arith.constant 0 : index
    %c0_9 = arith.constant 0 : index
    %13 = vector.load %arg5[%c0_8, %c0_9] : memref<256x256xbf16, #tpu.memory_space<vmem>>, vector<256x256xbf16>
    %cst_10 = arith.constant dense<0.000000e+00> : vector<8x256xf32>
    %14 = tpu.matmul %12, %13, %cst_10 {dimension_numbers = #tpu.dot_dimension_numbers<[1], [0], [0], [1], [0, 0, 1, 1], [], []>} : vector<8x256xbf16>, vector<256x256xbf16>, vector<8x256xf32> -> vector<8x256xf32>
    %c0_11 = arith.constant 0 : index
    %c0_12 = arith.constant 0 : index
    %15 = vector.load %arg6[%c0_11, %c0_12] : memref<1x256xf32, #tpu.memory_space<vmem>>, vector<1x256xf32>
    %16 = vector.broadcast %15 : vector<1x256xf32> to vector<8x256xf32>
    %17 = arith.addf %14, %16 : vector<8x256xf32>
    %cst_13 = arith.constant 0.00999999977 : f32
    %18 = vector.broadcast %cst_13 : f32 to vector<8x256xf32>
    %19 = arith.mulf %18, %17 : vector<8x256xf32>
    %20 = arith.maximumf %17, %19 : vector<8x256xf32>
    %c0_14 = arith.constant 0 : index
    %c0_15 = arith.constant 0 : index
    %21 = vector.load %arg7[%c0_14, %c0_15] : memref<1x256xf32, #tpu.memory_space<vmem>>, vector<1x256xf32>
    %22 = vector.broadcast %21 : vector<1x256xf32> to vector<8x256xf32>
    %23 = arith.mulf %20, %22 : vector<8x256xf32>
    %cst_16 = arith.constant dense<0.000000e+00> : vector<8xf32>
    %24 = vector.multi_reduction <add>, %23, %cst_16 [1] : vector<8x256xf32> to vector<8xf32>
    %25 = vector.shape_cast %24 : vector<8xf32> to vector<8x1xf32>
    %c0_17 = arith.constant 0 : index
    %c0_18 = arith.constant 0 : index
    %26 = vector.load %arg8[%c0_17, %c0_18] : memref<1x1xf32, #tpu.memory_space<vmem>>, vector<1x1xf32>
    %27 = vector.broadcast %26 : vector<1x1xf32> to vector<8x1xf32>
    %28 = arith.addf %25, %27 : vector<8x1xf32>
    %c0_19 = arith.constant 0 : index
    %c0_20 = arith.constant 0 : index
    %29 = vector.load %arg9[%c0_19, %c0_20] : memref<8x1xf32, #tpu.memory_space<vmem>>, vector<8x1xf32>
    tpu.vector_store %arg9[%c0_19, %c0_20], %28 {strides = array<i32>} : memref<8x1xf32, #tpu.memory_space<vmem>>, vector<8x1xf32>,
    return
  }
  func.func @transform_0(%arg0: i32) -> (i32, i32) {
    %c0_i32 = arith.constant 0 : i32
    %c0_i32_0 = arith.constant 0 : i32
    return %arg0, %c0_i32 : i32, i32
  }
  func.func @transform_1(%arg0: i32) -> (i32, i32) {
    %c0_i32 = arith.constant 0 : i32
    %c0_i32_0 = arith.constant 0 : i32
    return %arg0, %c0_i32 : i32, i32
  }
  func.func @transform_2(%arg0: i32) -> (i32, i32) {
    %c0_i32 = arith.constant 0 : i32
    %c0_i32_0 = arith.constant 0 : i32
    %c0_i32_1 = arith.constant 0 : i32
    return %c0_i32, %c0_i32_0 : i32, i32
  }
  func.func @transform_3(%arg0: i32) -> (i32, i32) {
    %c0_i32 = arith.constant 0 : i32
    %c0_i32_0 = arith.constant 0 : i32
    %c0_i32_1 = arith.constant 0 : i32
    return %c0_i32, %c0_i32_0 : i32, i32
  }
  func.func @transform_4(%arg0: i32) -> (i32, i32) {
    %c0_i32 = arith.constant 0 : i32
    %c0_i32_0 = arith.constant 0 : i32
    %c0_i32_1 = arith.constant 0 : i32
    return %c0_i32, %c0_i32_0 : i32, i32
  }
  func.func @transform_5(%arg0: i32) -> (i32, i32) {
    %c0_i32 = arith.constant 0 : i32
    %c0_i32_0 = arith.constant 0 : i32
    %c0_i32_1 = arith.constant 0 : i32
    return %c0_i32, %c0_i32_0 : i32, i32
  }
  func.func @transform_6(%arg0: i32) -> (i32, i32) {
    %c0_i32 = arith.constant 0 : i32
    %c0_i32_0 = arith.constant 0 : i32
    %c0_i32_1 = arith.constant 0 : i32
    return %c0_i32, %c0_i32_0 : i32, i32
  }
  func.func @transform_7(%arg0: i32) -> (i32, i32) {
    %c0_i32 = arith.constant 0 : i32
    %c0_i32_0 = arith.constant 0 : i32
    %c0_i32_1 = arith.constant 0 : i32
    return %c0_i32, %c0_i32_0 : i32, i32
  }
  func.func @transform_8(%arg0: i32) -> (i32, i32) {
    %c0_i32 = arith.constant 0 : i32
    %c0_i32_0 = arith.constant 0 : i32
    return %arg0, %c0_i32 : i32, i32
  }
}

module attributes {stable_mosaic.version = 11 : i64} {
  func.func @mlp_kernel(%arg0: i32, %arg1: memref<8x768xf32, #tpu.memory_space<vmem>>, %arg2: memref<8x768xf32, #tpu.memory_space<vmem>>, %arg3: memref<768x256xbf16, #tpu.memory_space<vmem>>, %arg4: memref<1x256xf32, #tpu.memory_space<vmem>>, %arg5: memref<256x256xbf16, #tpu.memory_space<vmem>>, %arg6: memref<1x256xf32, #tpu.memory_space<vmem>>, %arg7: memref<1x256xf32, #tpu.memory_space<vmem>>, %arg8: memref<1x1xf32, #tpu.memory_space<vmem>>, %arg9: memref<8x1xf32, #tpu.memory_space<vmem>>) attributes {dimension_semantics = [#tpu.dimension_semantics<parallel>], iteration_bounds = array<i64: 1>, scalar_prefetch = 0 : i64, scratch_operands = 0 : i64, tpu.core_type = #tpu.core_type<tc>, window_params = [{transform_indices = @transform_0, window_bounds = array<i64: 8, 768>}, {transform_indices = @transform_1, window_bounds = array<i64: 8, 768>}, {pipeline_mode = #tpu.pipeline_mode<synchronous>, transform_indices = @transform_2, window_bounds = array<i64: 768, 256>}, {pipeline_mode = #tpu.pipeline_mode<synchronous>, transform_indices = @transform_3, window_bounds = array<i64: 1, 256>}, {pipeline_mode = #tpu.pipeline_mode<synchronous>, transform_indices = @transform_4, window_bounds = array<i64: 256, 256>}, {pipeline_mode = #tpu.pipeline_mode<synchronous>, transform_indices = @transform_5, window_bounds = array<i64: 1, 256>}, {pipeline_mode = #tpu.pipeline_mode<synchronous>, transform_indices = @transform_6, window_bounds = array<i64: 1, 256>}, {pipeline_mode = #tpu.pipeline_mode<synchronous>, transform_indices = @transform_7, window_bounds = array<i64: 1, 1>}, {transform_indices = @transform_8, window_bounds = array<i64: 8, 1>}]} {
    %c0 = arith.constant 0 : index
    %c0_0 = arith.constant 0 : index
    %0 = vector.load %arg2[%c0, %c0_0] : memref<8x768xf32, #tpu.memory_space<vmem>>, vector<8x768xf32>
    %c0_1 = arith.constant 0 : index
    %c0_2 = arith.constant 0 : index
    %1 = vector.load %arg1[%c0_1, %c0_2] : memref<8x768xf32, #tpu.memory_space<vmem>>, vector<8x768xf32>
    %2 = arith.subf %0, %1 : vector<8x768xf32>
    %3 = arith.truncf %2 : vector<8x768xf32> to vector<8x768xbf16>
    %c0_3 = arith.constant 0 : index
    %c0_4 = arith.constant 0 : index
    %4 = vector.load %arg3[%c0_3, %c0_4] : memref<768x256xbf16, #tpu.memory_space<vmem>>, vector<768x256xbf16>
    %cst = arith.constant dense<0.000000e+00> : vector<8x256xf32>
    %5 = tpu.matmul %3, %4, %cst {dimension_numbers = #tpu.dot_dimension_numbers<[1], [0], [0], [1], [0, 0, 1, 1], [], []>} : vector<8x768xbf16>, vector<768x256xbf16>, vector<8x256xf32> -> vector<8x256xf32>
    %c0_5 = arith.constant 0 : index
    %c0_6 = arith.constant 0 : index
    %6 = vector.load %arg4[%c0_5, %c0_6] : memref<1x256xf32, #tpu.memory_space<vmem>>, vector<1x256xf32>
    %7 = vector.broadcast %6 : vector<1x256xf32> to vector<8x256xf32>
    %8 = arith.addf %5, %7 : vector<8x256xf32>
    %cst_7 = arith.constant 0.00999999977 : f32
    %9 = vector.broadcast %cst_7 : f32 to vector<8x256xf32>
    %10 = arith.mulf %9, %8 : vector<8x256xf32>
    %11 = arith.maximumf %8, %10 : vector<8x256xf32>
    %12 = arith.truncf %11 : vector<8x256xf32> to vector<8x256xbf16>
    %c0_8 = arith.constant 0 : index
    %c0_9 = arith.constant 0 : index
    %13 = vector.load %arg5[%c0_8, %c0_9] : memref<256x256xbf16, #tpu.memory_space<vmem>>, vector<256x256xbf16>
    %cst_10 = arith.constant dense<0.000000e+00> : vector<8x256xf32>
    %14 = tpu.matmul %12, %13, %cst_10 {dimension_numbers = #tpu.dot_dimension_numbers<[1], [0], [0], [1], [0, 0, 1, 1], [], []>} : vector<8x256xbf16>, vector<256x256xbf16>, vector<8x256xf32> -> vector<8x256xf32>
    %c0_11 = arith.constant 0 : index
    %c0_12 = arith.constant 0 : index
    %15 = vector.load %arg6[%c0_11, %c0_12] : memref<1x256xf32, #tpu.memory_space<vmem>>, vector<1x256xf32>
    %16 = vector.broadcast %15 : vector<1x256xf32> to vector<8x256xf32>
    %17 = arith.addf %14, %16 : vector<8x256xf32>
    %cst_13 = arith.constant 0.00999999977 : f32
    %18 = vector.broadcast %cst_13 : f32 to vector<8x256xf32>
    %19 = arith.mulf %18, %17 : vector<8x256xf32>
    %20 = arith.maximumf %17, %19 : vector<8x256xf32>
    %c0_14 = arith.constant 0 : index
    %c0_15 = arith.constant 0 : index
    %21 = vector.load %arg7[%c0_14, %c0_15] : memref<1x256xf32, #tpu.memory_space<vmem>>, vector<1x256xf32>
    %22 = vector.broadcast %21 : vector<1x256xf32> to vector<8x256xf32>
    %23 = arith.mulf %20, %22 : vector<8x256xf32>
    %cst_16 = arith.constant dense<0.000000e+00> : vector<8xf32>
    %24 = vector.multi_reduction <add>, %23, %cst_16 [1] : vector<8x256xf32> to vector<8xf32>
    %25 = vector.shape_cast %24 : vector<8xf32> to vector<8x1xf32>
    %c0_17 = arith.constant 0 : index
    %c0_18 = arith.constant 0 : index
    %26 = vector.load %arg8[%c0_17, %c0_18] : memref<1x1xf32, #tpu.memory_space<vmem>>, vector<1x1xf32>
    %27 = vector.broadcast %26 : vector<1x1xf32> to vector<8x1xf32>
    %28 = arith.addf %25, %27 : vector<8x1xf32>
    %c0_19 = arith.constant 0 : index
    %c0_20 = arith.constant 0 : index
    %29 = vector.load %arg9[%c0_19, %c0_20] : memref<8x1xf32, #tpu.memory_space<vmem>>, vector<8x1xf32>
    tpu.vector_store %arg9[%c0_19, %c0_20], %28 {strides = array<i32>} : memref<8x1xf32, #tpu.memory_space<vmem>>, vector<8x1xf32>,
    return
  }
  func.func @transform_0(%arg0: i32) -> (i32, i32) {
    %c0_i32 = arith.constant 0 : i32
    %c0_i32_0 = arith.constant 0 : i32
    return %arg0, %c0_i32 : i32, i32
  }
  func.func @transform_1(%arg0: i32) -> (i32, i32) {
    %c0_i32 = arith.constant 0 : i32
    %c0_i32_0 = arith.constant 0 : i32
    return %arg0, %c0_i32 : i32, i32
  }
  func.func @transform_2(%arg0: i32) -> (i32, i32) {
    %c0_i32 = arith.constant 0 : i32
    %c0_i32_0 = arith.constant 0 : i32
    %c0_i32_1 = arith.constant 0 : i32
    return %c0_i32, %c0_i32_0 : i32, i32
  }
  func.func @transform_3(%arg0: i32) -> (i32, i32) {
    %c0_i32 = arith.constant 0 : i32
    %c0_i32_0 = arith.constant 0 : i32
    %c0_i32_1 = arith.constant 0 : i32
    return %c0_i32, %c0_i32_0 : i32, i32
  }
  func.func @transform_4(%arg0: i32) -> (i32, i32) {
    %c0_i32 = arith.constant 0 : i32
    %c0_i32_0 = arith.constant 0 : i32
    %c0_i32_1 = arith.constant 0 : i32
    return %c0_i32, %c0_i32_0 : i32, i32
  }
  func.func @transform_5(%arg0: i32) -> (i32, i32) {
    %c0_i32 = arith.constant 0 : i32
    %c0_i32_0 = arith.constant 0 : i32
    %c0_i32_1 = arith.constant 0 : i32
    return %c0_i32, %c0_i32_0 : i32, i32
  }
  func.func @transform_6(%arg0: i32) -> (i32, i32) {
    %c0_i32 = arith.constant 0 : i32
    %c0_i32_0 = arith.constant 0 : i32
    %c0_i32_1 = arith.constant 0 : i32
    return %c0_i32, %c0_i32_0 : i32, i32
  }
  func.func @transform_7(%arg0: i32) -> (i32, i32) {
    %c0_i32 = arith.constant 0 : i32
    %c0_i32_0 = arith.constant 0 : i32
    %c0_i32_1 = arith.constant 0 : i32
    return %c0_i32, %c0_i32_0 : i32, i32
  }
  func.func @transform_8(%arg0: i32) -> (i32, i32) {
    %c0_i32 = arith.constant 0 : i32
    %c0_i32_0 = arith.constant 0 : i32
    return %arg0, %c0_i32 : i32, i32
  }
}

</mosaic_0001>

<bundles_post_ra>
// kernel: tpu_custom_call.1
= control target key start
LH: loop header
LB: loop body
LE: loop exit
PB: predicated region body
PF: predicated region fallthrough
CT: control target
= control target key end

     0   :  { %s1649_s0 = inlined_call_operand.hbm [shape: f32[8,768], index: 0, kind: input, shape index: {}]   ;;  %s1650_s1 = inlined_call_operand.hbm [shape: f32[8,768], index: 1, kind: input, shape index: {}]   ;;  %s1651_s2 = inlined_call_operand.hbm [shape: bf16[768,256], index: 2, kind: input, shape index: {}]   ;;  %s1652_s3 = inlined_call_operand.vmem [shape: f32[1,256], index: 3, kind: input, shape index: {}]   ;;  %s1653_s4 = inlined_call_operand.hbm [shape: bf16[256,256], index: 4, kind: input, shape index: {}]   ;;  %s1654_s5 = inlined_call_operand.vmem [shape: f32[1,256], index: 5, kind: input, shape index: {}]   ;;  %s1655_s6 = inlined_call_operand.vmem [shape: f32[1,256], index: 6, kind: input, shape index: {}]   ;;  %s1656_s7 = inlined_call_operand.<no memory space> [shape: f32[1,1], index: 7, kind: input, shape index: {}]   ;;  %s1657_s8 = inlined_call_operand.vmem [shape: f32[8,1], index: 8, kind: output, shape index: {}]  }
   0x1   :  { %v13_v0 = vstv %s1656_s7 }
   0x2   :  { %14 = vst [vmem:[#allocation2] sm:$0x1] %v13_v0 }
   0x3   :  { %15 = vsyncpa [#allocation4], 0 }
   0x4   :  { %16 = vsyncpa [#allocation6], 0 }
   0x5   :  { %17 = vsyncpa [#allocation9], 0  ;;  %s1535_s29 = smov [#allocation5]   ;;  %s1536_s9 = smov [#allocation3]  }
   0x6   :  { %s34_s30 = sshll.u32 %s1535_s29, 4  ;;  %s24_s10 = sshll.u32 %s1536_s9, 4  ;;  %s35_s30 = int_to_ptr.vmem [resolvable:$true] %s34_s30  ;;  %s25_s10 = int_to_ptr.vmem [resolvable:$true] %s24_s10 }
   0x7   :  { %s1441_s13 = scalar_lea.hbm %s1650_s1, 768 }
   0x8   :  { %p1442_p0 = scmp.ne.s32.totalorder %s1650_s1, %s1441_s13  ;;  %p1445_p1 = scmp.lt.u32.totalorder %s1441_s13, %s1650_s1 }
   0xa   :  { %p1447_p2 = pnand %p1445_p1, %p1442_p0 }
   0xc   :  { %1450 = shalt.err (!%p1447_p2)
}
   0xd   :  { %s1451_s17 = scalar_lea.vmem %s35_s30, 768  ;;  %p1456_p4 = scmp.lt.s32.totalorder %s35_s30, %s35_s30 }
   0xe   :  { %p1452_p3 = scmp.ne.s32.totalorder %s35_s30, %s1451_s17  ;;  %p1457_p5 = scmp.lt.s32.totalorder %s1451_s17, %s1451_s17 }
  0x10   :  { %p1458_p6 = por %p1457_p5, %p1456_p4 }
  0x12   :  { %p1459_p7 = pnand %p1458_p6, %p1452_p3 }
  0x14   :  { %1462 = shalt.err (!%p1459_p7)
}
  0x15   :  { %37 = dma.hbm_to_vmem [thread:$0]  %s1650_s1, 768, %s35_s30, [#allocation6]  }
  0x16   :  { %s1463_s22 = scalar_lea.hbm %s1649_s0, 768 }
  0x17   :  { %p1464_p8 = scmp.ne.s32.totalorder %s1649_s0, %s1463_s22  ;;  %p1467_p9 = scmp.lt.u32.totalorder %s1463_s22, %s1649_s0 }
  0x19   :  { %p1469_p10 = pnand %p1467_p9, %p1464_p8 }
  0x1b   :  { %1472 = shalt.err (!%p1469_p10)
}
  0x1c   :  { %s1473_s27 = scalar_lea.vmem %s25_s10, 768  ;;  %p1478_p12 = scmp.lt.s32.totalorder %s25_s10, %s25_s10 }
  0x1d   :  { %p1474_p11 = scmp.ne.s32.totalorder %s25_s10, %s1473_s27  ;;  %p1479_p13 = scmp.lt.s32.totalorder %s1473_s27, %s1473_s27 }
  0x1f   :  { %p1480_p0 = por %p1479_p13, %p1478_p12 }
  0x21   :  { %p1481_p1 = pnand %p1480_p0, %p1474_p11 }
  0x23   :  { %1484 = shalt.err (!%p1481_p1)
}
  0x24   :  { %27 = dma.hbm_to_vmem [thread:$0]  %s1649_s0, 768, %s25_s10, [#allocation4]  }
  0x25   :  { %s1537_s29 = smov [#allocation7]   ;;  %s1485_s12 = scalar_lea.hbm %s1651_s2, 12288 }
  0x26   :  { %s43_s30 = sshll.u32 %s1537_s29, 4  ;;  %p1486_p2 = scmp.ne.s32.totalorder %s1651_s2, %s1485_s12  ;;  %s44_s30 = int_to_ptr.vmem [resolvable:$true] %s43_s30 }
  0x27   :  { %p1489_p3 = scmp.lt.u32.totalorder %s1485_s12, %s1651_s2 }
  0x29   :  { %p1491_p4 = pnand %p1489_p3, %p1486_p2 }
  0x2b   :  { %1494 = shalt.err (!%p1491_p4)
}
  0x2c   :  { %s1495_s7 = scalar_lea.vmem %s44_s30, 12288  ;;  %p1500_p6 = scmp.lt.s32.totalorder %s44_s30, %s44_s30 }
  0x2d   :  { %p1496_p5 = scmp.ne.s32.totalorder %s44_s30, %s1495_s7  ;;  %p1501_p7 = scmp.lt.s32.totalorder %s1495_s7, %s1495_s7 }
  0x2f   :  { %p1502_p8 = por %p1501_p7, %p1500_p6 }
  0x31   :  { %p1503_p9 = pnand %p1502_p8, %p1496_p5 }
  0x33   :  { %1506 = shalt.err (!%p1503_p9)
}
  0x34   :  { %s1538_s0 = smov 128   ;;  %s1539_s10 = smov 8  }
  0x35   :  { %49 = dma.hbm_to_vmem [thread:$0]  %s1651_s2, 12288, %s44_s30, [#allocation6], %s1538_s0, %s1538_s0, %s1539_s10  }
  0x36   :  { %s1540_s19 = smov [#allocation8]   ;;  %s1507_s23 = scalar_lea.hbm %s1653_s4, 4096 }
  0x37   :  { %s57_s20 = sshll.u32 %s1540_s19, 4  ;;  %p1508_p10 = scmp.ne.s32.totalorder %s1653_s4, %s1507_s23  ;;  %s58_s20 = int_to_ptr.vmem [resolvable:$true] %s57_s20 }
  0x38   :  { %p1511_p11 = scmp.lt.u32.totalorder %s1507_s23, %s1653_s4 }
  0x3a   :  { %p1513_p12 = pnand %p1511_p11, %p1508_p10 }
  0x3c   :  { %1516 = shalt.err (!%p1513_p12)
}
  0x3d   :  { %s1517_s1 = scalar_lea.vmem %s58_s20, 4096  ;;  %p1522_p0 = scmp.lt.s32.totalorder %s58_s20, %s58_s20 }
  0x3e   :  { %p1518_p13 = scmp.ne.s32.totalorder %s58_s20, %s1517_s1  ;;  %p1523_p1 = scmp.lt.s32.totalorder %s1517_s1, %s1517_s1 }
  0x40   :  { %p1524_p2 = por %p1523_p1, %p1522_p0 }
  0x42   :  { %p1525_p3 = pnand %p1524_p2, %p1518_p13 }
  0x44   :  { %1528 = shalt.err (!%p1525_p3)
}
  0x45   :  { %63 = dma.hbm_to_vmem [thread:$0]  %s1653_s4, 4096, %s58_s20, [#allocation9], %s1538_s0, %s1538_s0, %s1539_s10  }
  0x46   :  { %1529 = dma.done.wait [#allocation4], 768  }
  0x47   :  { %1530 = vsyncadd [#allocation4], 4294966528 }
  0x48   :  { %1531 = dma.done.wait [#allocation6], 13056  }
  0x49   :  { %1532 = vsyncadd [#allocation6], 4294954240 }
  0x4a   :  { %1533 = dma.done.wait [#allocation9], 4096  }
  0x4b   :  { %1534 = vsyncadd [#allocation9], 4294963200  ;;  %v1249_v1 = vld [vmem:[#allocation7 + $0x104] ss:$8 sps:$4 sm:$0xff]   ;;  %v1251_v2 = vld [vmem:[#allocation7 + $0x100] ss:$8 sps:$4 sm:$0xff]  }
  0x4c   :  { %735 = vmatprep.subr.bf16.mxu0 %v1249_v1  ;;  %v1252_v3 = vld [vmem:[#allocation7 + $0x114] ss:$8 sps:$4 sm:$0xff]   ;;  %v1254_v4 = vld [vmem:[#allocation7 + $0x110] ss:$8 sps:$4 sm:$0xff]   ;;  %v1255_v5 = vld [vmem:[#allocation7 + $0x124] ss:$8 sps:$4 sm:$0xff]  }
  0x4d   :  { %736 = vmatpush1.bf16.msra.mxu0 %v1251_v2  ;;  %v1257_v6 = vld [vmem:[#allocation7 + $0x120] ss:$8 sps:$4 sm:$0xff]   ;;  %v1258_v7 = vld [vmem:[#allocation7 + $0x134] ss:$8 sps:$4 sm:$0xff]   ;;  %v1260_v8 = vld [vmem:[#allocation7 + $0x130] ss:$8 sps:$4 sm:$0xff]  }
  0x4e   :  { %737 = vmatprep.subr.bf16.mxu0 %v1252_v3  ;;  %v1261_v9 = vld [vmem:[#allocation7 + $0x144] ss:$8 sps:$4 sm:$0xff]   ;;  %v1263_v10 = vld [vmem:[#allocation7 + $0x140] ss:$8 sps:$4 sm:$0xff]   ;;  %v1264_v11 = vld [vmem:[#allocation7 + $0x154] ss:$8 sps:$4 sm:$0xff]  }
  0x4f   :  { %v1266_v12 = vld [vmem:[#allocation7 + $0x150] ss:$8 sps:$4 sm:$0xff]   ;;  %v1267_v13 = vld [vmem:[#allocation7 + $0x164] ss:$8 sps:$4 sm:$0xff]   ;;  %v1296_v15 = vld [vmem:[#allocation7] ss:$8 sps:$4 sm:$0xff]  }
  0x50   :  { %v1294_v14 = vld [vmem:[#allocation7 + $0x4] ss:$8 sps:$4 sm:$0xff]   ;;  %v1269_v16 = vld [vmem:[#allocation7 + $0x160] ss:$8 sps:$4 sm:$0xff]   ;;  %v1270_v17 = vld [vmem:[#allocation7 + $0x174] ss:$8 sps:$4 sm:$0xff]  }
  0x51   :  { %738 = vmatpush1.bf16.msra.mxu0 %v1254_v4  ;;  %694 = vmatprep.subr.bf16.mxu1 %v1294_v14  ;;  %v1300_v18 = vld [vmem:[#allocation7 + $0x14] ss:$8 sps:$4 sm:$0xff]   ;;  %v1302_v19 = vld [vmem:[#allocation7 + $0x10] ss:$8 sps:$4 sm:$0xff]   ;;  %v85_v20 = vld [vmem:[#allocation5 + $0x18] sm:$0xff]  ;;  %vm1097_vm0 = vcmask 7168  }
  0x52   :  { %739 = vmatprep.subr.bf16.mxu0 %v1255_v5  ;;  %695 = vmatpush1.bf16.msra.mxu1 %v1296_v15  ;;  %v91_v21 = vld [vmem:[#allocation3 + $0x18] sm:$0xff]  ;;  %v1306_v25 = vld [vmem:[#allocation7 + $0x24] ss:$8 sps:$4 sm:$0xff]   ;;  %v1308_v26 = vld [vmem:[#allocation7 + $0x20] ss:$8 sps:$4 sm:$0xff]  }
  0x53   :  { %696 = vmatprep.subr.bf16.mxu1 %v1300_v18  ;;  %v97_v22 = vsub.f32 %v85_v20, %v91_v21  ;;  %v1272_v23 = vld [vmem:[#allocation7 + $0x170] ss:$8 sps:$4 sm:$0xff]   ;;  %v1273_v27 = vld [vmem:[#allocation7 + $0x184] ss:$8 sps:$4 sm:$0xff]   ;;  %v1275_v28 = vld [vmem:[#allocation7 + $0x180] ss:$8 sps:$4 sm:$0xff]  }
  0x54   :  { %v1312_v29 = vld [vmem:[#allocation7 + $0x34] ss:$8 sps:$4 sm:$0xff]   ;;  %v1314_v31 = vld [vmem:[#allocation7 + $0x30] ss:$8 sps:$4 sm:$0xff]   ;;  %v1318_v32 = vld [vmem:[#allocation7 + $0x44] ss:$8 sps:$4 sm:$0xff]  }
  0x55   :  { %740 = vmatpush1.bf16.msra.mxu0 %v1257_v6  ;;  %v103_v24 = vpack.c.bf16 %v97_v22, %v97_v22  ;;  %v1276_v30 = vld [vmem:[#allocation7 + $0x194] ss:$8 sps:$4 sm:$0xff]   ;;  %v1278_v33 = vld [vmem:[#allocation7 + $0x190] ss:$8 sps:$4 sm:$0xff]   ;;  %v1279_v34 = vld [vmem:[#allocation7 + $0x1a4] ss:$8 sps:$4 sm:$0xff]  }
  0x56   :  { %741 = vmatprep.subr.bf16.mxu0 %v1258_v7  ;;  %697 = vmatpush1.bf16.msra.mxu1 %v1302_v19  ;;  %v1320_v35 = vld [vmem:[#allocation7 + $0x40] ss:$8 sps:$4 sm:$0xff]   ;;  %v1324_v36 = vld [vmem:[#allocation7 + $0x54] ss:$8 sps:$4 sm:$0xff]   ;;  %v1326_v39 = vld [vmem:[#allocation7 + $0x50] ss:$8 sps:$4 sm:$0xff]  }
  0x57   :  { %767 = vmatprep.mubr.bf16.mxu0 %v103_v24  ;;  %698 = vmatprep.subr.bf16.mxu1 %v1306_v25  ;;  %v1281_v37 = vld [vmem:[#allocation7 + $0x1a0] ss:$8 sps:$4 sm:$0xff]   ;;  %v1282_v38 = vld [vmem:[#allocation7 + $0x1b4] ss:$8 sps:$4 sm:$0xff]   ;;  %v1330_v40 = vld [vmem:[#allocation7 + $0x64] ss:$8 sps:$4 sm:$0xff]  }
  0x58   :  { %v1284_v41 = vld [vmem:[#allocation7 + $0x1b0] ss:$8 sps:$4 sm:$0xff]   ;;  %v1285_v42 = vld [vmem:[#allocation7 + $0x1c4] ss:$8 sps:$4 sm:$0xff]   ;;  %v1332_v43 = vld [vmem:[#allocation7 + $0x60] ss:$8 sps:$4 sm:$0xff]  }
  0x59   :  { %742 = vmatpush1.bf16.msra.mxu0 %v1260_v8  ;;  %v1336_v44 = vld [vmem:[#allocation7 + $0x74] ss:$8 sps:$4 sm:$0xff]   ;;  %v1287_v45 = vld [vmem:[#allocation7 + $0x1c0] ss:$8 sps:$4 sm:$0xff]   ;;  %v1338_v47 = vld [vmem:[#allocation7 + $0x70] ss:$8 sps:$4 sm:$0xff]  }
  0x5a   :  { %743 = vmatprep.subr.bf16.mxu0 %v1261_v9  ;;  %699 = vmatpush1.bf16.msra.mxu1 %v1308_v26  ;;  %v1288_v46 = vld [vmem:[#allocation7 + $0x1d4] ss:$8 sps:$4 sm:$0xff]   ;;  %v1342_v48 = vld [vmem:[#allocation7 + $0x84] ss:$8 sps:$4 sm:$0xff]   ;;  %v1290_v49 = vld [vmem:[#allocation7 + $0x1d0] ss:$8 sps:$4 sm:$0xff]  }
  0x5b   :  { %700 = vmatprep.subr.bf16.mxu1 %v1312_v29  ;;  %v1291_v50 = vld [vmem:[#allocation7 + $0x1e4] ss:$8 sps:$4 sm:$0xff]   ;;  %v1344_v51 = vld [vmem:[#allocation7 + $0x80] ss:$8 sps:$4 sm:$0xff]   ;;  %v1348_v52 = vld [vmem:[#allocation7 + $0x94] ss:$8 sps:$4 sm:$0xff]  }
  0x5c   :  { %v1293_v53 = vld [vmem:[#allocation7 + $0x1e0] ss:$8 sps:$4 sm:$0xff]   ;;  %v1297_v54 = vld [vmem:[#allocation7 + $0x1f4] ss:$8 sps:$4 sm:$0xff]   ;;  %v1350_v57 = vld [vmem:[#allocation7 + $0x90] ss:$8 sps:$4 sm:$0xff]  }
  0x5d   :  { %744 = vmatpush1.bf16.msra.mxu0 %v1263_v10  ;;  %v84_v55 = vld [vmem:[#allocation5 + $0x10] sm:$0xff]  ;;  %v90_v56 = vld [vmem:[#allocation3 + $0x10] sm:$0xff]  ;;  %v83_v5 = vld [vmem:[#allocation5 + $0x8] sm:$0xff] }
  0x5e   :  { %745 = vmatprep.subr.bf16.mxu0 %v1264_v11  ;;  %701 = vmatpush1.bf16.msra.mxu1 %v1314_v31  ;;  %v1354_v58 = vld [vmem:[#allocation7 + $0xa4] ss:$8 sps:$4 sm:$0xff]   ;;  %v1299_v59 = vld [vmem:[#allocation7 + $0x1f0] ss:$8 sps:$4 sm:$0xff]   ;;  %v96_v60 = vsub.f32 %v84_v55, %v90_v56  ;;  %v1356_v62 = vld [vmem:[#allocation7 + $0xa0] ss:$8 sps:$4 sm:$0xff]  }
  0x5f   :  { %702 = vmatprep.subr.bf16.mxu1 %v1318_v32  ;;  %v1305_v61 = vld [vmem:[#allocation7 + $0x204] ss:$8 sps:$4 sm:$0xff]   ;;  %v1360_v63 = vld [vmem:[#allocation7 + $0xb4] ss:$8 sps:$4 sm:$0xff]   ;;  %v1303_v0 = vld [vmem:[#allocation7 + $0x200] ss:$8 sps:$4 sm:$0xff]  }
  0x60   :  { %v102_v1 = vpack.c.bf16 %v96_v60, %v96_v60  ;;  %v1311_v2 = vld [vmem:[#allocation7 + $0x214] ss:$8 sps:$4 sm:$0xff]   ;;  %v1362_v3 = vld [vmem:[#allocation7 + $0xb0] ss:$8 sps:$4 sm:$0xff]   ;;  %v1366_v4 = vld [vmem:[#allocation7 + $0xc4] ss:$8 sps:$4 sm:$0xff]  }
  0x61   :  { %746 = vmatpush1.bf16.msra.mxu0 %v1266_v12  ;;  %v89_v6 = vld [vmem:[#allocation3 + $0x8] sm:$0xff]  ;;  %v1309_v8 = vld [vmem:[#allocation7 + $0x210] ss:$8 sps:$4 sm:$0xff]   ;;  %v1372_v14 = vld [vmem:[#allocation7 + $0xd4] ss:$8 sps:$4 sm:$0xff]  }
  0x62   :  { %747 = vmatprep.subr.bf16.mxu0 %v1267_v13  ;;  %703 = vmatpush1.bf16.msra.mxu1 %v1320_v35  ;;  %v95_v7 = vsub.f32 %v83_v5, %v89_v6  ;;  %v87_v9 = vld [vmem:[#allocation5 + $0x28] sm:$0xff]  ;;  %v1317_v10 = vld [vmem:[#allocation7 + $0x224] ss:$8 sps:$4 sm:$0xff]   ;;  %v1368_v11 = vld [vmem:[#allocation7 + $0xc0] ss:$8 sps:$4 sm:$0xff]  }
  0x63   :  { %704 = vmatprep.subr.bf16.mxu1 %v1324_v36  ;;  %v93_v13 = vld [vmem:[#allocation3 + $0x28] sm:$0xff]  ;;  %v1323_v18 = vld [vmem:[#allocation7 + $0x234] ss:$8 sps:$4 sm:$0xff]   ;;  %v1374_v19 = vld [vmem:[#allocation7 + $0xd0] ss:$8 sps:$4 sm:$0xff]  }
  0x64   :  { %v101_v12 = vpack.c.bf16 %v95_v7, %v95_v7  ;;  %v99_v15 = vsub.f32 %v87_v9, %v93_v13  ;;  %v1378_v20 = vld [vmem:[#allocation7 + $0xe4] ss:$8 sps:$4 sm:$0xff]   ;;  %v1321_v21 = vld [vmem:[#allocation7 + $0x230] ss:$8 sps:$4 sm:$0xff]   ;;  %v1384_v26 = vld [vmem:[#allocation7 + $0xf4] ss:$8 sps:$4 sm:$0xff]  }
  0x65   :  { %748 = vmatpush1.bf16.msra.mxu0 %v1269_v16  ;;  %v1315_v16 = vld [vmem:[#allocation7 + $0x220] ss:$8 sps:$4 sm:$0xff]   ;;  %v1329_v22 = vld [vmem:[#allocation7 + $0x244] ss:$8 sps:$4 sm:$0xff]   ;;  %v82_v24 = vld [vmem:[#allocation5] sm:$0xff] }
  0x66   :  { %749 = vmatprep.subr.bf16.mxu0 %v1270_v17  ;;  %705 = vmatpush1.bf16.msra.mxu1 %v1326_v39  ;;  %v105_v17 = vpack.c.bf16 %v99_v15, %v99_v15  ;;  %v88_v25 = vld [vmem:[#allocation3] sm:$0xff]  ;;  %v1335_v29 = vld [vmem:[#allocation7 + $0x254] ss:$8 sps:$4 sm:$0xff]   ;;  %v1333_v32 = vld [vmem:[#allocation7 + $0x250] ss:$8 sps:$4 sm:$0xff]  }
  0x67   :  { %706 = vmatprep.subr.bf16.mxu1 %v1330_v40  ;;  %726 = vmatprep.mubr.bf16.mxu1 %v101_v12  ;;  %v1395_v31 = vld [vmem:[#allocation8 + $0x4] ss:$8 sps:$4 sm:$0xff]   ;;  %v1393_v35 = vld [vmem:[#allocation8] ss:$8 sps:$4 sm:$0xff]   ;;  %v1398_v36 = vld [vmem:[#allocation8 + $0x14] ss:$8 sps:$4 sm:$0xff]  }
  0x68   :  { %v1347_v39 = vld [vmem:[#allocation7 + $0x274] ss:$8 sps:$4 sm:$0xff]   ;;  %v1401_v40 = vld [vmem:[#allocation8 + $0x24] ss:$8 sps:$4 sm:$0xff]   ;;  %v1387_v5 = vld [vmem:[#allocation7 + $0x2e0] ss:$8 sps:$4 sm:$0xff]  }
  0x69   :  { %750 = vmatpush1.bf16.msra.mxu0 %v1272_v23  ;;  %v1380_v23 = vld [vmem:[#allocation7 + $0xe0] ss:$8 sps:$4 sm:$0xff]   ;;  %v1371_v55 = vld [vmem:[#allocation7 + $0x2b4] ss:$8 sps:$4 sm:$0xff]   ;;  %v1413_v56 = vld [vmem:[#allocation8 + $0x64] ss:$8 sps:$4 sm:$0xff]  }
  0x6a   :  { %751 = vmatprep.subr.bf16.mxu0 %v1273_v27  ;;  %707 = vmatpush1.bf16.msra.mxu1 %v1332_v43  ;;  %v1327_v27 = vld [vmem:[#allocation7 + $0x240] ss:$8 sps:$4 sm:$0xff]   ;;  %v1353_v43 = vld [vmem:[#allocation7 + $0x284] ss:$8 sps:$4 sm:$0xff]   ;;  %v1416_v60 = vld [vmem:[#allocation8 + $0x74] ss:$8 sps:$4 sm:$0xff]  }
  0x6b   :  { %708 = vmatprep.subr.bf16.mxu1 %v1336_v44  ;;  %v1404_v44 = vld [vmem:[#allocation8 + $0x34] ss:$8 sps:$4 sm:$0xff]   ;;  %v92_v7 = vld [vmem:[#allocation3 + $0x20] sm:$0xff]  ;;  %v1390_v12 = vld [vmem:[#allocation7 + $0x2f0] ss:$8 sps:$4 sm:$0xff]  }
  0x6c   :  { %v86_v6 = vld [vmem:[#allocation5 + $0x20] sm:$0xff]  ;;  %v1423_v13 = vld [vmem:[#allocation8 + $0xa0] ss:$8 sps:$4 sm:$0xff]  }
  0x6d   :  { %752 = vmatpush1.bf16.msra.mxu0 %v1275_v28  ;;  %v94_v28 = vsub.f32 %v82_v24, %v88_v25  ;;  %v1392_v9 = vld [vmem:[#allocation7 + $0x2f4] ss:$8 sps:$4 sm:$0xff]   ;;  %v1438_v24 = vld [vmem:[#allocation8 + $0xf0] ss:$8 sps:$4 sm:$0xff]  }
  0x6e   :  { %753 = vmatprep.subr.bf16.mxu0 %v1276_v30  ;;  %709 = vmatpush1.bf16.msra.mxu1 %v1338_v47  ;;  %v1386_v30 = vld [vmem:[#allocation7 + $0xf0] ss:$8 sps:$4 sm:$0xff]   ;;  %v1359_v47 = vld [vmem:[#allocation7 + $0x294] ss:$8 sps:$4 sm:$0xff]  }
  0x6f   :  { %710 = vmatprep.subr.bf16.mxu1 %v1342_v48  ;;  %v1407_v48 = vld [vmem:[#allocation8 + $0x44] ss:$8 sps:$4 sm:$0xff]  }
  0x71   :  { %754 = vmatpush1.bf16.msra.mxu0 %v1278_v33  ;;  %v100_v33 = vpack.c.bf16 %v94_v28, %v94_v28 }
  0x72   :  { %755 = vmatprep.subr.bf16.mxu0 %v1279_v34  ;;  %711 = vmatpush1.bf16.msra.mxu1 %v1344_v51  ;;  %v1341_v34 = vld [vmem:[#allocation7 + $0x264] ss:$8 sps:$4 sm:$0xff]  }
  0x73   :  { %712 = vmatprep.subr.bf16.mxu1 %v1348_v52  ;;  %v1365_v51 = vld [vmem:[#allocation7 + $0x2a4] ss:$8 sps:$4 sm:$0xff]   ;;  %v1410_v52 = vld [vmem:[#allocation8 + $0x54] ss:$8 sps:$4 sm:$0xff]  }
  0x75   :  { %756 = vmatpush1.bf16.msra.mxu0 %v1281_v37  ;;  %v1339_v37 = vld [vmem:[#allocation7 + $0x260] ss:$8 sps:$4 sm:$0xff]  }
  0x76   :  { %757 = vmatprep.subr.bf16.mxu0 %v1282_v38  ;;  %713 = vmatpush1.bf16.msra.mxu1 %v1350_v57  ;;  %v1396_v38 = vld [vmem:[#allocation8 + $0x10] ss:$8 sps:$4 sm:$0xff]  }
  0x77   :  { %714 = vmatprep.subr.bf16.mxu1 %v1354_v58  ;;  %v1369_v57 = vld [vmem:[#allocation7 + $0x2b0] ss:$8 sps:$4 sm:$0xff]   ;;  %v1411_v58 = vld [vmem:[#allocation8 + $0x60] ss:$8 sps:$4 sm:$0xff]  }
  0x79   :  { %758 = vmatpush1.bf16.msra.mxu0 %v1284_v41  ;;  %v1345_v41 = vld [vmem:[#allocation7 + $0x270] ss:$8 sps:$4 sm:$0xff]  }
  0x7a   :  { %759 = vmatprep.subr.bf16.mxu0 %v1285_v42  ;;  %715 = vmatpush1.bf16.msra.mxu1 %v1356_v62  ;;  %v1399_v42 = vld [vmem:[#allocation8 + $0x20] ss:$8 sps:$4 sm:$0xff]   ;;  %v1414_v62 = vld [vmem:[#allocation8 + $0x70] ss:$8 sps:$4 sm:$0xff]  }
  0x7b   :  { %716 = vmatprep.subr.bf16.mxu1 %v1360_v63  ;;  %v1383_v63 = vld [vmem:[#allocation7 + $0x2d4] ss:$8 sps:$4 sm:$0xff]  }
  0x7d   :  { %760 = vmatpush1.bf16.msra.mxu0 %v1287_v45  ;;  %v1351_v45 = vld [vmem:[#allocation7 + $0x280] ss:$8 sps:$4 sm:$0xff]  }
  0x7e   :  { %761 = vmatprep.subr.bf16.mxu0 %v1288_v46  ;;  %717 = vmatpush1.bf16.msra.mxu1 %v1362_v3  ;;  %v1402_v46 = vld [vmem:[#allocation8 + $0x30] ss:$8 sps:$4 sm:$0xff]   ;;  %v1389_v3 = vld [vmem:[#allocation7 + $0x2e4] ss:$8 sps:$4 sm:$0xff]  }
  0x7f   :  { %718 = vmatprep.subr.bf16.mxu1 %v1366_v4  ;;  %v1422_v4 = vld [vmem:[#allocation8 + $0x94] ss:$8 sps:$4 sm:$0xff]  }
  0x81   :  { %762 = vmatpush1.bf16.msra.mxu0 %v1290_v49  ;;  %v1357_v49 = vld [vmem:[#allocation7 + $0x290] ss:$8 sps:$4 sm:$0xff]  }
  0x82   :  { %763 = vmatprep.subr.bf16.mxu0 %v1291_v50  ;;  %719 = vmatpush1.bf16.msra.mxu1 %v1368_v11  ;;  %v1405_v50 = vld [vmem:[#allocation8 + $0x40] ss:$8 sps:$4 sm:$0xff]   ;;  %v98_v11 = vsub.f32 %v86_v6, %v92_v7 }
  0x83   :  { %720 = vmatprep.subr.bf16.mxu1 %v1372_v14  ;;  %v1428_v14 = vld [vmem:[#allocation8 + $0xb4] ss:$8 sps:$4 sm:$0xff]  }
  0x84   :  { %v104_v15 = vpack.c.bf16 %v98_v11, %v98_v11 }
  0x85   :  { %764 = vmatpush1.bf16.msra.mxu0 %v1293_v53  ;;  %v1363_v53 = vld [vmem:[#allocation7 + $0x2a0] ss:$8 sps:$4 sm:$0xff]  }
  0x86   :  { %765 = vmatprep.subr.bf16.mxu0 %v1297_v54  ;;  %721 = vmatpush1.bf16.msra.mxu1 %v1374_v19  ;;  %v1408_v54 = vld [vmem:[#allocation8 + $0x50] ss:$8 sps:$4 sm:$0xff]   ;;  %v1434_v19 = vld [vmem:[#allocation8 + $0xd4] ss:$8 sps:$4 sm:$0xff]  }
  0x87   :  { %722 = vmatprep.subr.bf16.mxu1 %v1378_v20  ;;  %v1432_v20 = vld [vmem:[#allocation8 + $0xd0] ss:$8 sps:$4 sm:$0xff]  }
  0x89   :  { %766 = vmatpush1.bf16.msra.mxu0 %v1299_v59  ;;  %v1377_v59 = vld [vmem:[#allocation7 + $0x2c4] ss:$8 sps:$4 sm:$0xff]  }
  0x8a   :  { %776 = vmatprep.subr.bf16.mxu0 %v1305_v61  ;;  %723 = vmatpush1.bf16.msra.mxu1 %v1380_v23  ;;  %v1375_v61 = vld [vmem:[#allocation7 + $0x2c0] ss:$8 sps:$4 sm:$0xff]   ;;  %v1440_v23 = vld [vmem:[#allocation8 + $0xf4] ss:$8 sps:$4 sm:$0xff]  }
  0x8b   :  { %724 = vmatprep.subr.bf16.mxu1 %v1384_v26 }
  0x8c   :  { %768 = vmatmul.mubr.bf16.vlgmr.msra.gmra.mrb[0].mxu0 %v102_v1  ;;  %v1381_v1 = vld [vmem:[#allocation7 + $0x2d0] ss:$8 sps:$4 sm:$0xff]  }
  0x8d   :  { %777 = vmatpush1.bf16.msra.mxu0 %v1303_v0  ;;  %808 = vmatprep.mubr.bf16.mxu0 %v105_v17  ;;  %v1419_v0 = vld [vmem:[#allocation8 + $0x84] ss:$8 sps:$4 sm:$0xff]   ;;  %v1429_v17 = vld [vmem:[#allocation8 + $0xc0] ss:$8 sps:$4 sm:$0xff]  }
  0x8e   :  { %778 = vmatprep.subr.bf16.mxu0 %v1311_v2  ;;  %725 = vmatpush1.bf16.msra.mxu1 %v1386_v30  ;;  %v1417_v2 = vld [vmem:[#allocation8 + $0x80] ss:$8 sps:$4 sm:$0xff]  }
  0x8f   :  { %1027 = vmatprep.subr.bf16.mxu1 %v1395_v31 }
  0x91   :  { %779 = vmatpush1.bf16.msra.mxu0 %v1309_v8  ;;  %727 = vmatmul.mubr.bf16.vlgmr.msra.gmra.mrb[0].mxu1 %v100_v33  ;;  %v1420_v8 = vld [vmem:[#allocation8 + $0x90] ss:$8 sps:$4 sm:$0xff]  }
  0x92   :  { %780 = vmatprep.subr.bf16.mxu0 %v1317_v10  ;;  %1028 = vmatpush1.bf16.msra.mxu1 %v1393_v35  ;;  %v1425_v10 = vld [vmem:[#allocation8 + $0xa4] ss:$8 sps:$4 sm:$0xff]  }
  0x93   :  { %1029 = vmatprep.subr.bf16.mxu1 %v1398_v36 }
  0x95   :  { %781 = vmatpush1.bf16.msra.mxu0 %v1315_v16  ;;  %v1426_v16 = vld [vmem:[#allocation8 + $0xb0] ss:$8 sps:$4 sm:$0xff]  }
  0x96   :  { %782 = vmatprep.subr.bf16.mxu0 %v1323_v18  ;;  %1030 = vmatpush1.bf16.msra.mxu1 %v1396_v38  ;;  %v1431_v18 = vld [vmem:[#allocation8 + $0xc4] ss:$8 sps:$4 sm:$0xff]  }
  0x97   :  { %1031 = vmatprep.subr.bf16.mxu1 %v1401_v40 }
  0x99   :  { %783 = vmatpush1.bf16.msra.mxu0 %v1321_v21  ;;  %v1437_v21 = vld [vmem:[#allocation8 + $0xe4] ss:$8 sps:$4 sm:$0xff]  }
  0x9a   :  { %784 = vmatprep.subr.bf16.mxu0 %v1329_v22  ;;  %1032 = vmatpush1.bf16.msra.mxu1 %v1399_v42  ;;  %v1435_v22 = vld [vmem:[#allocation8 + $0xe0] ss:$8 sps:$4 sm:$0xff]  }
  0x9b   :  { %1033 = vmatprep.subr.bf16.mxu1 %v1404_v44 }
  0x9d   :  { %785 = vmatpush1.bf16.msra.mxu0 %v1327_v27 }
  0x9e   :  { %786 = vmatprep.subr.bf16.mxu0 %v1335_v29  ;;  %1034 = vmatpush1.bf16.msra.mxu1 %v1402_v46  ;;  %v204_v29 = vlaneseq }
  0x9f   :  { %1035 = vmatprep.subr.bf16.mxu1 %v1407_v48 }
  0xa0   :  { %v205_v30 = vshrl.u32 %v204_v29, 7 }
  0xa1   :  { %787 = vmatpush1.bf16.msra.mxu0 %v1333_v32  ;;  %v202_v32 = vld [vmem:[%s1652_s3] sm:$0x3] }
  0xa2   :  { %788 = vmatprep.subr.bf16.mxu0 %v1341_v34  ;;  %1036 = vmatpush1.bf16.msra.mxu1 %v1405_v50  ;;  %v206_v31 = vsub.s32 0, %v205_v30  ;;  %v210_v33 = vsub.s32 1, %v205_v30  ;;  %v855_v50 = vld [vmem:[%s1654_s5] sm:$0x3] }
  0xa3   :  { %1037 = vmatprep.subr.bf16.mxu1 %v1410_v52 }
  0xa4   :  { %v207_v34 = vrot.slane %v202_v32, %v206_v31  ;;  %v211_v35 = vrot.slane %v202_v32, %v210_v33  ;;  %v864_v52 = vrot.slane %v855_v50, %v210_v33 }
  0xa5   :  { %789 = vmatpush1.bf16.msra.mxu0 %v1339_v37 }
  0xa6   :  { %790 = vmatprep.subr.bf16.mxu0 %v1347_v39  ;;  %1038 = vmatpush1.bf16.msra.mxu1 %v1408_v54  ;;  %v1072_v54 = vld [vmem:[%s1655_s6] sm:$0x3] }
  0xa7   :  { %1039 = vmatprep.subr.bf16.mxu1 %v1413_v56 }
  0xa9   :  { %791 = vmatpush1.bf16.msra.mxu0 %v1345_v41 }
  0xaa   :  { %792 = vmatprep.subr.bf16.mxu0 %v1353_v43  ;;  %1040 = vmatpush1.bf16.msra.mxu1 %v1411_v58 }
  0xab   :  { %1041 = vmatprep.subr.bf16.mxu1 %v1416_v60 }
  0xad   :  { %793 = vmatpush1.bf16.msra.mxu0 %v1351_v45 }
  0xae   :  { %794 = vmatprep.subr.bf16.mxu0 %v1359_v47  ;;  %1042 = vmatpush1.bf16.msra.mxu1 %v1414_v62 }
  0xaf   :  { %1043 = vmatprep.subr.bf16.mxu1 %v1419_v0 }
  0xb1   :  { %795 = vmatpush1.bf16.msra.mxu0 %v1357_v49 }
  0xb2   :  { %796 = vmatprep.subr.bf16.mxu0 %v1365_v51  ;;  %1044 = vmatpush1.bf16.msra.mxu1 %v1417_v2  ;;  %v860_v51 = vrot.slane %v855_v50, %v206_v31 }
  0xb3   :  { %1045 = vmatprep.subr.bf16.mxu1 %v1422_v4 }
  0xb5   :  { %797 = vmatpush1.bf16.msra.mxu0 %v1363_v53 }
  0xb6   :  { %798 = vmatprep.subr.bf16.mxu0 %v1371_v55  ;;  %1046 = vmatpush1.bf16.msra.mxu1 %v1420_v8 }
  0xb7   :  { %1047 = vmatprep.subr.bf16.mxu1 %v1425_v10 }
  0xb9   :  { %799 = vmatpush1.bf16.msra.mxu0 %v1369_v57 }
  0xba   :  { %800 = vmatprep.subr.bf16.mxu0 %v1377_v59  ;;  %1048 = vmatpush1.bf16.msra.mxu1 %v1423_v13 }
  0xbb   :  { %1049 = vmatprep.subr.bf16.mxu1 %v1428_v14 }
  0xbd   :  { %801 = vmatpush1.bf16.msra.mxu0 %v1375_v61  ;;  %v1077_v61 = vrot.slane %v1072_v54, %v206_v31 }
  0xbe   :  { %802 = vmatprep.subr.bf16.mxu0 %v1383_v63  ;;  %1050 = vmatpush1.bf16.msra.mxu1 %v1426_v16  ;;  %v1081_v63 = vrot.slane %v1072_v54, %v210_v33 }
  0xbf   :  { %1051 = vmatprep.subr.bf16.mxu1 %v1431_v18 }
  0xc1   :  { %803 = vmatpush1.bf16.msra.mxu0 %v1381_v1 }
  0xc2   :  { %804 = vmatprep.subr.bf16.mxu0 %v1389_v3  ;;  %1052 = vmatpush1.bf16.msra.mxu1 %v1429_v17 }
  0xc3   :  { %1053 = vmatprep.subr.bf16.mxu1 %v1434_v19 }
  0xc5   :  { %805 = vmatpush1.bf16.msra.mxu0 %v1387_v5  ;;  %v1234_v5 = vld [vmem:[#allocation2] ss:$0 sm:$0xff] }
  0xc6   :  { %806 = vmatprep.subr.bf16.mxu0 %v1392_v9  ;;  %1054 = vmatpush1.bf16.msra.mxu1 %v1432_v20 }
  0xc7   :  { %1055 = vmatprep.subr.bf16.mxu1 %v1437_v21 }
  0xc9   :  { %807 = vmatpush1.bf16.msra.mxu0 %v1390_v12 }
  0xca   :  { %1056 = vmatpush1.bf16.msra.mxu1 %v1435_v22 }
  0xcb   :  { %1057 = vmatprep.subr.bf16.mxu1 %v1440_v23 }
  0xcc   :  { %809 = vmatmul.mubr.bf16.vlgmr.msra.gmra.mrb[0].mxu0 %v104_v15 }
  0xce   :  { %1058 = vmatpush1.bf16.msra.mxu1 %v1438_v24 }
 0x164   :  { %v728_v25 = vpop.f32.mrb[0].mxu1 }
 0x165   :  { %v730_v26 = vpop.f32.mrb[1].mxu1  ;;  %v729_v36 = vadd.f32 %v728_v25, %v207_v34 }
 0x166   :  { %v732_v27 = vpop.f32.mrb[2].mxu1  ;;  %v731_v37 = vadd.f32 %v730_v26, %v211_v35 }
 0x167   :  { %v733_v28 = vpop.f32.mrb[3].mxu1 }
 0x19f   :  { %v810_v38 = vpop.f32.mrb[0].mxu0 }
 0x1a0   :  { %v1236_v39 = vadd.f32 %v810_v38, %v729_v36  ;;  %v812_v40 = vpop.f32.mrb[1].mxu0 }
 0x1a1   :  { %v1238_v41 = vadd.f32 %v812_v40, %v731_v37  ;;  %v814_v42 = vpop.f32.mrb[2].mxu0 }
 0x1a2   :  { %v817_v43 = vmul.f32 0.01, %v1236_v39  ;;  %v815_v44 = vpop.f32.mrb[3].mxu0 }
 0x1a3   :  { %v818_v45 = vmul.f32 0.01, %v1238_v41 }
 0x1a4   :  { %v819_v46 = vmax.f32 %v1236_v39, %v817_v43 }
 0x1a5   :  { %v820_v47 = vmax.f32 %v1238_v41, %v818_v45 }
 0x1a6   :  { %v821_v49 = vpack.c.bf16 %v819_v46, %v819_v46 }
 0x1a7   :  { %v822_v48 = vpack.c.bf16 %v820_v47, %v820_v47 }
 0x1a9   :  { %1059 = vmatprep.mubr.bf16.mxu1 %v822_v48 }
 0x1aa   :  { %1060 = vmatmul.mubr.bf16.vlgmr.msra.gmra.mrb[4].mxu1 %v821_v49 }
 0x27d   :  { %v1061_v53 = vpop.f32.mrb[4].mxu1 }
 0x27e   :  { %v1062_v55 = vadd.f32 %v1061_v53, %v860_v51  ;;  %v1063_v56 = vpop.f32.mrb[5].mxu1 }
 0x27f   :  { %v1064_v57 = vadd.f32 %v1063_v56, %v864_v52  ;;  %v1065_v58 = vpop.f32.mrb[6].mxu1 }
 0x280   :  { %v1068_v59 = vmul.f32 0.01, %v1062_v55  ;;  %v1066_v60 = vpop.f32.mrb[7].mxu1 }
 0x281   :  { %v1069_v62 = vmul.f32 0.01, %v1064_v57 }
 0x282   :  { %v1070_v0 = vmax.f32 %v1062_v55, %v1068_v59 }
 0x283   :  { %v1071_v1 = vmax.f32 %v1064_v57, %v1069_v62 }
 0x284   :  { %v1084_v2 = vmul.f32 %v1077_v61, %v1070_v0 }
 0x285   :  { %v1085_v3 = vmul.f32 %v1081_v63, %v1071_v1 }
 0x287   :  { %v1086_v4 = vadd.f32 %v1085_v3, %v1084_v2 }
 0x289   :  { %1087 = vadd.xlane.f32.xlu0 %v1086_v4 }
 0x316   :  { %v1088_v6 = vpop.xlane.xlu0 %1087 }
 0x317   :  { %v1096_v7 = vadd.f32 %v1234_v5, %v1088_v6 }
 0x319   :  { %1098 = vst.msk [vmem:[%s1657_s8] sm:$0xff] %vm1097_vm0, %v1096_v7 }
 0x31a   :  { %1103 = vsyncpa [#allocation4], 1 }
 0x31b   :  { %1104 = vsyncpa [#allocation6], 1 }
 0x31c   :  { %1105 = vsyncpa [#allocation9], 1 }

// kernel: tpu_custom_call.1
= control target key start
LH: loop header
LB: loop body
LE: loop exit
PB: predicated region body
PF: predicated region fallthrough
CT: control target
= control target key end

     0   :  { %s1649_s0 = inlined_call_operand.hbm [shape: f32[8,768], index: 0, kind: input, shape index: {}]   ;;  %s1650_s1 = inlined_call_operand.hbm [shape: f32[8,768], index: 1, kind: input, shape index: {}]   ;;  %s1651_s2 = inlined_call_operand.hbm [shape: bf16[768,256], index: 2, kind: input, shape index: {}]   ;;  %s1652_s3 = inlined_call_operand.vmem [shape: f32[1,256], index: 3, kind: input, shape index: {}]   ;;  %s1653_s4 = inlined_call_operand.hbm [shape: bf16[256,256], index: 4, kind: input, shape index: {}]   ;;  %s1654_s5 = inlined_call_operand.vmem [shape: f32[1,256], index: 5, kind: input, shape index: {}]   ;;  %s1655_s6 = inlined_call_operand.vmem [shape: f32[1,256], index: 6, kind: input, shape index: {}]   ;;  %s1656_s7 = inlined_call_operand.<no memory space> [shape: f32[1,1], index: 7, kind: input, shape index: {}]   ;;  %s1657_s8 = inlined_call_operand.vmem [shape: f32[8,1], index: 8, kind: output, shape index: {}]  }
   0x1   :  { %v13_v0 = vstv %s1656_s7 }
   0x2   :  { %14 = vst [vmem:[#allocation2] sm:$0x1] %v13_v0 }
   0x3   :  { %15 = vsyncpa [#allocation4], 0 }
   0x4   :  { %16 = vsyncpa [#allocation6], 0 }
   0x5   :  { %17 = vsyncpa [#allocation9], 0  ;;  %s1535_s29 = smov [#allocation5]   ;;  %s1536_s9 = smov [#allocation3]  }
   0x6   :  { %s34_s30 = sshll.u32 %s1535_s29, 4  ;;  %s24_s10 = sshll.u32 %s1536_s9, 4  ;;  %s35_s30 = int_to_ptr.vmem [resolvable:$true] %s34_s30  ;;  %s25_s10 = int_to_ptr.vmem [resolvable:$true] %s24_s10 }
   0x7   :  { %s1441_s13 = scalar_lea.hbm %s1650_s1, 768 }
   0x8   :  { %p1442_p0 = scmp.ne.s32.totalorder %s1650_s1, %s1441_s13  ;;  %p1445_p1 = scmp.lt.u32.totalorder %s1441_s13, %s1650_s1 }
   0xa   :  { %p1447_p2 = pnand %p1445_p1, %p1442_p0 }
   0xc   :  { %1450 = shalt.err (!%p1447_p2)
}
   0xd   :  { %s1451_s17 = scalar_lea.vmem %s35_s30, 768  ;;  %p1456_p4 = scmp.lt.s32.totalorder %s35_s30, %s35_s30 }
   0xe   :  { %p1452_p3 = scmp.ne.s32.totalorder %s35_s30, %s1451_s17  ;;  %p1457_p5 = scmp.lt.s32.totalorder %s1451_s17, %s1451_s17 }
  0x10   :  { %p1458_p6 = por %p1457_p5, %p1456_p4 }
  0x12   :  { %p1459_p7 = pnand %p1458_p6, %p1452_p3 }
  0x14   :  { %1462 = shalt.err (!%p1459_p7)
}
  0x15   :  { %37 = dma.hbm_to_vmem [thread:$0]  %s1650_s1, 768, %s35_s30, [#allocation6]  }
  0x16   :  { %s1463_s22 = scalar_lea.hbm %s1649_s0, 768 }
  0x17   :  { %p1464_p8 = scmp.ne.s32.totalorder %s1649_s0, %s1463_s22  ;;  %p1467_p9 = scmp.lt.u32.totalorder %s1463_s22, %s1649_s0 }
  0x19   :  { %p1469_p10 = pnand %p1467_p9, %p1464_p8 }
  0x1b   :  { %1472 = shalt.err (!%p1469_p10)
}
  0x1c   :  { %s1473_s27 = scalar_lea.vmem %s25_s10, 768  ;;  %p1478_p12 = scmp.lt.s32.totalorder %s25_s10, %s25_s10 }
  0x1d   :  { %p1474_p11 = scmp.ne.s32.totalorder %s25_s10, %s1473_s27  ;;  %p1479_p13 = scmp.lt.s32.totalorder %s1473_s27, %s1473_s27 }
  0x1f   :  { %p1480_p0 = por %p1479_p13, %p1478_p12 }
  0x21   :  { %p1481_p1 = pnand %p1480_p0, %p1474_p11 }
  0x23   :  { %1484 = shalt.err (!%p1481_p1)
}
  0x24   :  { %27 = dma.hbm_to_vmem [thread:$0]  %s1649_s0, 768, %s25_s10, [#allocation4]  }
  0x25   :  { %s1537_s29 = smov [#allocation7]   ;;  %s1485_s12 = scalar_lea.hbm %s1651_s2, 12288 }
  0x26   :  { %s43_s30 = sshll.u32 %s1537_s29, 4  ;;  %p1486_p2 = scmp.ne.s32.totalorder %s1651_s2, %s1485_s12  ;;  %s44_s30 = int_to_ptr.vmem [resolvable:$true] %s43_s30 }
  0x27   :  { %p1489_p3 = scmp.lt.u32.totalorder %s1485_s12, %s1651_s2 }
  0x29   :  { %p1491_p4 = pnand %p1489_p3, %p1486_p2 }
  0x2b   :  { %1494 = shalt.err (!%p1491_p4)
}
  0x2c   :  { %s1495_s7 = scalar_lea.vmem %s44_s30, 12288  ;;  %p1500_p6 = scmp.lt.s32.totalorder %s44_s30, %s44_s30 }
  0x2d   :  { %p1496_p5 = scmp.ne.s32.totalorder %s44_s30, %s1495_s7  ;;  %p1501_p7 = scmp.lt.s32.totalorder %s1495_s7, %s1495_s7 }
  0x2f   :  { %p1502_p8 = por %p1501_p7, %p1500_p6 }
  0x31   :  { %p1503_p9 = pnand %p1502_p8, %p1496_p5 }
  0x33   :  { %1506 = shalt.err (!%p1503_p9)
}
  0x34   :  { %s1538_s0 = smov 128   ;;  %s1539_s10 = smov 8  }
  0x35   :  { %49 = dma.hbm_to_vmem [thread:$0]  %s1651_s2, 12288, %s44_s30, [#allocation6], %s1538_s0, %s1538_s0, %s1539_s10  }
  0x36   :  { %s1540_s19 = smov [#allocation8]   ;;  %s1507_s23 = scalar_lea.hbm %s1653_s4, 4096 }
  0x37   :  { %s57_s20 = sshll.u32 %s1540_s19, 4  ;;  %p1508_p10 = scmp.ne.s32.totalorder %s1653_s4, %s1507_s23  ;;  %s58_s20 = int_to_ptr.vmem [resolvable:$true] %s57_s20 }
  0x38   :  { %p1511_p11 = scmp.lt.u32.totalorder %s1507_s23, %s1653_s4 }
  0x3a   :  { %p1513_p12 = pnand %p1511_p11, %p1508_p10 }
  0x3c   :  { %1516 = shalt.err (!%p1513_p12)
}
  0x3d   :  { %s1517_s1 = scalar_lea.vmem %s58_s20, 4096  ;;  %p1522_p0 = scmp.lt.s32.totalorder %s58_s20, %s58_s20 }
  0x3e   :  { %p1518_p13 = scmp.ne.s32.totalorder %s58_s20, %s1517_s1  ;;  %p1523_p1 = scmp.lt.s32.totalorder %s1517_s1, %s1517_s1 }
  0x40   :  { %p1524_p2 = por %p1523_p1, %p1522_p0 }
  0x42   :  { %p1525_p3 = pnand %p1524_p2, %p1518_p13 }
  0x44   :  { %1528 = shalt.err (!%p1525_p3)
}
  0x45   :  { %63 = dma.hbm_to_vmem [thread:$0]  %s1653_s4, 4096, %s58_s20, [#allocation9], %s1538_s0, %s1538_s0, %s1539_s10  }
  0x46   :  { %1529 = dma.done.wait [#allocation4], 768  }
  0x47   :  { %1530 = vsyncadd [#allocation4], 4294966528 }
  0x48   :  { %1531 = dma.done.wait [#allocation6], 13056  }
  0x49   :  { %1532 = vsyncadd [#allocation6], 4294954240 }
  0x4a   :  { %1533 = dma.done.wait [#allocation9], 4096  }
  0x4b   :  { %1534 = vsyncadd [#allocation9], 4294963200  ;;  %v1249_v1 = vld [vmem:[#allocation7 + $0x104] ss:$8 sps:$4 sm:$0xff]   ;;  %v1251_v2 = vld [vmem:[#allocation7 + $0x100] ss:$8 sps:$4 sm:$0xff]  }
  0x4c   :  { %735 = vmatprep.subr.bf16.mxu0 %v1249_v1  ;;  %v1252_v3 = vld [vmem:[#allocation7 + $0x114] ss:$8 sps:$4 sm:$0xff]   ;;  %v1254_v4 = vld [vmem:[#allocation7 + $0x110] ss:$8 sps:$4 sm:$0xff]   ;;  %v1255_v5 = vld [vmem:[#allocation7 + $0x124] ss:$8 sps:$4 sm:$0xff]  }
  0x4d   :  { %736 = vmatpush1.bf16.msra.mxu0 %v1251_v2  ;;  %v1257_v6 = vld [vmem:[#allocation7 + $0x120] ss:$8 sps:$4 sm:$0xff]   ;;  %v1258_v7 = vld [vmem:[#allocation7 + $0x134] ss:$8 sps:$4 sm:$0xff]   ;;  %v1260_v8 = vld [vmem:[#allocation7 + $0x130] ss:$8 sps:$4 sm:$0xff]  }
  0x4e   :  { %737 = vmatprep.subr.bf16.mxu0 %v1252_v3  ;;  %v1261_v9 = vld [vmem:[#allocation7 + $0x144] ss:$8 sps:$4 sm:$0xff]   ;;  %v1263_v10 = vld [vmem:[#allocation7 + $0x140] ss:$8 sps:$4 sm:$0xff]   ;;  %v1264_v11 = vld [vmem:[#allocation7 + $0x154] ss:$8 sps:$4 sm:$0xff]  }
  0x4f   :  { %v1266_v12 = vld [vmem:[#allocation7 + $0x150] ss:$8 sps:$4 sm:$0xff]   ;;  %v1267_v13 = vld [vmem:[#allocation7 + $0x164] ss:$8 sps:$4 sm:$0xff]   ;;  %v1296_v15 = vld [vmem:[#allocation7] ss:$8 sps:$4 sm:$0xff]  }
  0x50   :  { %v1294_v14 = vld [vmem:[#allocation7 + $0x4] ss:$8 sps:$4 sm:$0xff]   ;;  %v1269_v16 = vld [vmem:[#allocation7 + $0x160] ss:$8 sps:$4 sm:$0xff]   ;;  %v1270_v17 = vld [vmem:[#allocation7 + $0x174] ss:$8 sps:$4 sm:$0xff]  }
  0x51   :  { %738 = vmatpush1.bf16.msra.mxu0 %v1254_v4  ;;  %694 = vmatprep.subr.bf16.mxu1 %v1294_v14  ;;  %v1300_v18 = vld [vmem:[#allocation7 + $0x14] ss:$8 sps:$4 sm:$0xff]   ;;  %v1302_v19 = vld [vmem:[#allocation7 + $0x10] ss:$8 sps:$4 sm:$0xff]   ;;  %v85_v20 = vld [vmem:[#allocation5 + $0x18] sm:$0xff]  ;;  %vm1097_vm0 = vcmask 7168  }
  0x52   :  { %739 = vmatprep.subr.bf16.mxu0 %v1255_v5  ;;  %695 = vmatpush1.bf16.msra.mxu1 %v1296_v15  ;;  %v91_v21 = vld [vmem:[#allocation3 + $0x18] sm:$0xff]  ;;  %v1306_v25 = vld [vmem:[#allocation7 + $0x24] ss:$8 sps:$4 sm:$0xff]   ;;  %v1308_v26 = vld [vmem:[#allocation7 + $0x20] ss:$8 sps:$4 sm:$0xff]  }
  0x53   :  { %696 = vmatprep.subr.bf16.mxu1 %v1300_v18  ;;  %v97_v22 = vsub.f32 %v85_v20, %v91_v21  ;;  %v1272_v23 = vld [vmem:[#allocation7 + $0x170] ss:$8 sps:$4 sm:$0xff]   ;;  %v1273_v27 = vld [vmem:[#allocation7 + $0x184] ss:$8 sps:$4 sm:$0xff]   ;;  %v1275_v28 = vld [vmem:[#allocation7 + $0x180] ss:$8 sps:$4 sm:$0xff]  }
  0x54   :  { %v1312_v29 = vld [vmem:[#allocation7 + $0x34] ss:$8 sps:$4 sm:$0xff]   ;;  %v1314_v31 = vld [vmem:[#allocation7 + $0x30] ss:$8 sps:$4 sm:$0xff]   ;;  %v1318_v32 = vld [vmem:[#allocation7 + $0x44] ss:$8 sps:$4 sm:$0xff]  }
  0x55   :  { %740 = vmatpush1.bf16.msra.mxu0 %v1257_v6  ;;  %v103_v24 = vpack.c.bf16 %v97_v22, %v97_v22  ;;  %v1276_v30 = vld [vmem:[#allocation7 + $0x194] ss:$8 sps:$4 sm:$0xff]   ;;  %v1278_v33 = vld [vmem:[#allocation7 + $0x190] ss:$8 sps:$4 sm:$0xff]   ;;  %v1279_v34 = vld [vmem:[#allocation7 + $0x1a4] ss:$8 sps:$4 sm:$0xff]  }
  0x56   :  { %741 = vmatprep.subr.bf16.mxu0 %v1258_v7  ;;  %697 = vmatpush1.bf16.msra.mxu1 %v1302_v19  ;;  %v1320_v35 = vld [vmem:[#allocation7 + $0x40] ss:$8 sps:$4 sm:$0xff]   ;;  %v1324_v36 = vld [vmem:[#allocation7 + $0x54] ss:$8 sps:$4 sm:$0xff]   ;;  %v1326_v39 = vld [vmem:[#allocation7 + $0x50] ss:$8 sps:$4 sm:$0xff]  }
  0x57   :  { %767 = vmatprep.mubr.bf16.mxu0 %v103_v24  ;;  %698 = vmatprep.subr.bf16.mxu1 %v1306_v25  ;;  %v1281_v37 = vld [vmem:[#allocation7 + $0x1a0] ss:$8 sps:$4 sm:$0xff]   ;;  %v1282_v38 = vld [vmem:[#allocation7 + $0x1b4] ss:$8 sps:$4 sm:$0xff]   ;;  %v1330_v40 = vld [vmem:[#allocation7 + $0x64] ss:$8 sps:$4 sm:$0xff]  }
  0x58   :  { %v1284_v41 = vld [vmem:[#allocation7 + $0x1b0] ss:$8 sps:$4 sm:$0xff]   ;;  %v1285_v42 = vld [vmem:[#allocation7 + $0x1c4] ss:$8 sps:$4 sm:$0xff]   ;;  %v1332_v43 = vld [vmem:[#allocation7 + $0x60] ss:$8 sps:$4 sm:$0xff]  }
  0x59   :  { %742 = vmatpush1.bf16.msra.mxu0 %v1260_v8  ;;  %v1336_v44 = vld [vmem:[#allocation7 + $0x74] ss:$8 sps:$4 sm:$0xff]   ;;  %v1287_v45 = vld [vmem:[#allocation7 + $0x1c0] ss:$8 sps:$4 sm:$0xff]   ;;  %v1338_v47 = vld [vmem:[#allocation7 + $0x70] ss:$8 sps:$4 sm:$0xff]  }
  0x5a   :  { %743 = vmatprep.subr.bf16.mxu0 %v1261_v9  ;;  %699 = vmatpush1.bf16.msra.mxu1 %v1308_v26  ;;  %v1288_v46 = vld [vmem:[#allocation7 + $0x1d4] ss:$8 sps:$4 sm:$0xff]   ;;  %v1342_v48 = vld [vmem:[#allocation7 + $0x84] ss:$8 sps:$4 sm:$0xff]   ;;  %v1290_v49 = vld [vmem:[#allocation7 + $0x1d0] ss:$8 sps:$4 sm:$0xff]  }
  0x5b   :  { %700 = vmatprep.subr.bf16.mxu1 %v1312_v29  ;;  %v1291_v50 = vld [vmem:[#allocation7 + $0x1e4] ss:$8 sps:$4 sm:$0xff]   ;;  %v1344_v51 = vld [vmem:[#allocation7 + $0x80] ss:$8 sps:$4 sm:$0xff]   ;;  %v1348_v52 = vld [vmem:[#allocation7 + $0x94] ss:$8 sps:$4 sm:$0xff]  }
  0x5c   :  { %v1293_v53 = vld [vmem:[#allocation7 + $0x1e0] ss:$8 sps:$4 sm:$0xff]   ;;  %v1297_v54 = vld [vmem:[#allocation7 + $0x1f4] ss:$8 sps:$4 sm:$0xff]   ;;  %v1350_v57 = vld [vmem:[#allocation7 + $0x90] ss:$8 sps:$4 sm:$0xff]  }
  0x5d   :  { %744 = vmatpush1.bf16.msra.mxu0 %v1263_v10  ;;  %v84_v55 = vld [vmem:[#allocation5 + $0x10] sm:$0xff]  ;;  %v90_v56 = vld [vmem:[#allocation3 + $0x10] sm:$0xff]  ;;  %v83_v5 = vld [vmem:[#allocation5 + $0x8] sm:$0xff] }
  0x5e   :  { %745 = vmatprep.subr.bf16.mxu0 %v1264_v11  ;;  %701 = vmatpush1.bf16.msra.mxu1 %v1314_v31  ;;  %v1354_v58 = vld [vmem:[#allocation7 + $0xa4] ss:$8 sps:$4 sm:$0xff]   ;;  %v1299_v59 = vld [vmem:[#allocation7 + $0x1f0] ss:$8 sps:$4 sm:$0xff]   ;;  %v96_v60 = vsub.f32 %v84_v55, %v90_v56  ;;  %v1356_v62 = vld [vmem:[#allocation7 + $0xa0] ss:$8 sps:$4 sm:$0xff]  }
  0x5f   :  { %702 = vmatprep.subr.bf16.mxu1 %v1318_v32  ;;  %v1305_v61 = vld [vmem:[#allocation7 + $0x204] ss:$8 sps:$4 sm:$0xff]   ;;  %v1360_v63 = vld [vmem:[#allocation7 + $0xb4] ss:$8 sps:$4 sm:$0xff]   ;;  %v1303_v0 = vld [vmem:[#allocation7 + $0x200] ss:$8 sps:$4 sm:$0xff]  }
  0x60   :  { %v102_v1 = vpack.c.bf16 %v96_v60, %v96_v60  ;;  %v1311_v2 = vld [vmem:[#allocation7 + $0x214] ss:$8 sps:$4 sm:$0xff]   ;;  %v1362_v3 = vld [vmem:[#allocation7 + $0xb0] ss:$8 sps:$4 sm:$0xff]   ;;  %v1366_v4 = vld [vmem:[#allocation7 + $0xc4] ss:$8 sps:$4 sm:$0xff]  }
  0x61   :  { %746 = vmatpush1.bf16.msra.mxu0 %v1266_v12  ;;  %v89_v6 = vld [vmem:[#allocation3 + $0x8] sm:$0xff]  ;;  %v1309_v8 = vld [vmem:[#allocation7 + $0x210] ss:$8 sps:$4 sm:$0xff]   ;;  %v1372_v14 = vld [vmem:[#allocation7 + $0xd4] ss:$8 sps:$4 sm:$0xff]  }
  0x62   :  { %747 = vmatprep.subr.bf16.mxu0 %v1267_v13  ;;  %703 = vmatpush1.bf16.msra.mxu1 %v1320_v35  ;;  %v95_v7 = vsub.f32 %v83_v5, %v89_v6  ;;  %v87_v9 = vld [vmem:[#allocation5 + $0x28] sm:$0xff]  ;;  %v1317_v10 = vld [vmem:[#allocation7 + $0x224] ss:$8 sps:$4 sm:$0xff]   ;;  %v1368_v11 = vld [vmem:[#allocation7 + $0xc0] ss:$8 sps:$4 sm:$0xff]  }
  0x63   :  { %704 = vmatprep.subr.bf16.mxu1 %v1324_v36  ;;  %v93_v13 = vld [vmem:[#allocation3 + $0x28] sm:$0xff]  ;;  %v1323_v18 = vld [vmem:[#allocation7 + $0x234] ss:$8 sps:$4 sm:$0xff]   ;;  %v1374_v19 = vld [vmem:[#allocation7 + $0xd0] ss:$8 sps:$4 sm:$0xff]  }
  0x64   :  { %v101_v12 = vpack.c.bf16 %v95_v7, %v95_v7  ;;  %v99_v15 = vsub.f32 %v87_v9, %v93_v13  ;;  %v1378_v20 = vld [vmem:[#allocation7 + $0xe4] ss:$8 sps:$4 sm:$0xff]   ;;  %v1321_v21 = vld [vmem:[#allocation7 + $0x230] ss:$8 sps:$4 sm:$0xff]   ;;  %v1384_v26 = vld [vmem:[#allocation7 + $0xf4] ss:$8 sps:$4 sm:$0xff]  }
  0x65   :  { %748 = vmatpush1.bf16.msra.mxu0 %v1269_v16  ;;  %v1315_v16 = vld [vmem:[#allocation7 + $0x220] ss:$8 sps:$4 sm:$0xff]   ;;  %v1329_v22 = vld [vmem:[#allocation7 + $0x244] ss:$8 sps:$4 sm:$0xff]   ;;  %v82_v24 = vld [vmem:[#allocation5] sm:$0xff] }
  0x66   :  { %749 = vmatprep.subr.bf16.mxu0 %v1270_v17  ;;  %705 = vmatpush1.bf16.msra.mxu1 %v1326_v39  ;;  %v105_v17 = vpack.c.bf16 %v99_v15, %v99_v15  ;;  %v88_v25 = vld [vmem:[#allocation3] sm:$0xff]  ;;  %v1335_v29 = vld [vmem:[#allocation7 + $0x254] ss:$8 sps:$4 sm:$0xff]   ;;  %v1333_v32 = vld [vmem:[#allocation7 + $0x250] ss:$8 sps:$4 sm:$0xff]  }
  0x67   :  { %706 = vmatprep.subr.bf16.mxu1 %v1330_v40  ;;  %726 = vmatprep.mubr.bf16.mxu1 %v101_v12  ;;  %v1395_v31 = vld [vmem:[#allocation8 + $0x4] ss:$8 sps:$4 sm:$0xff]   ;;  %v1393_v35 = vld [vmem:[#allocation8] ss:$8 sps:$4 sm:$0xff]   ;;  %v1398_v36 = vld [vmem:[#allocation8 + $0x14] ss:$8 sps:$4 sm:$0xff]  }
  0x68   :  { %v1347_v39 = vld [vmem:[#allocation7 + $0x274] ss:$8 sps:$4 sm:$0xff]   ;;  %v1401_v40 = vld [vmem:[#allocation8 + $0x24] ss:$8 sps:$4 sm:$0xff]   ;;  %v1387_v5 = vld [vmem:[#allocation7 + $0x2e0] ss:$8 sps:$4 sm:$0xff]  }
  0x69   :  { %750 = vmatpush1.bf16.msra.mxu0 %v1272_v23  ;;  %v1380_v23 = vld [vmem:[#allocation7 + $0xe0] ss:$8 sps:$4 sm:$0xff]   ;;  %v1371_v55 = vld [vmem:[#allocation7 + $0x2b4] ss:$8 sps:$4 sm:$0xff]   ;;  %v1413_v56 = vld [vmem:[#allocation8 + $0x64] ss:$8 sps:$4 sm:$0xff]  }
  0x6a   :  { %751 = vmatprep.subr.bf16.mxu0 %v1273_v27  ;;  %707 = vmatpush1.bf16.msra.mxu1 %v1332_v43  ;;  %v1327_v27 = vld [vmem:[#allocation7 + $0x240] ss:$8 sps:$4 sm:$0xff]   ;;  %v1353_v43 = vld [vmem:[#allocation7 + $0x284] ss:$8 sps:$4 sm:$0xff]   ;;  %v1416_v60 = vld [vmem:[#allocation8 + $0x74] ss:$8 sps:$4 sm:$0xff]  }
  0x6b   :  { %708 = vmatprep.subr.bf16.mxu1 %v1336_v44  ;;  %v1404_v44 = vld [vmem:[#allocation8 + $0x34] ss:$8 sps:$4 sm:$0xff]   ;;  %v92_v7 = vld [vmem:[#allocation3 + $0x20] sm:$0xff]  ;;  %v1390_v12 = vld [vmem:[#allocation7 + $0x2f0] ss:$8 sps:$4 sm:$0xff]  }
  0x6c   :  { %v86_v6 = vld [vmem:[#allocation5 + $0x20] sm:$0xff]  ;;  %v1423_v13 = vld [vmem:[#allocation8 + $0xa0] ss:$8 sps:$4 sm:$0xff]  }
  0x6d   :  { %752 = vmatpush1.bf16.msra.mxu0 %v1275_v28  ;;  %v94_v28 = vsub.f32 %v82_v24, %v88_v25  ;;  %v1392_v9 = vld [vmem:[#allocation7 + $0x2f4] ss:$8 sps:$4 sm:$0xff]   ;;  %v1438_v24 = vld [vmem:[#allocation8 + $0xf0] ss:$8 sps:$4 sm:$0xff]  }
  0x6e   :  { %753 = vmatprep.subr.bf16.mxu0 %v1276_v30  ;;  %709 = vmatpush1.bf16.msra.mxu1 %v1338_v47  ;;  %v1386_v30 = vld [vmem:[#allocation7 + $0xf0] ss:$8 sps:$4 sm:$0xff]   ;;  %v1359_v47 = vld [vmem:[#allocation7 + $0x294] ss:$8 sps:$4 sm:$0xff]  }
  0x6f   :  { %710 = vmatprep.subr.bf16.mxu1 %v1342_v48  ;;  %v1407_v48 = vld [vmem:[#allocation8 + $0x44] ss:$8 sps:$4 sm:$0xff]  }
  0x71   :  { %754 = vmatpush1.bf16.msra.mxu0 %v1278_v33  ;;  %v100_v33 = vpack.c.bf16 %v94_v28, %v94_v28 }
  0x72   :  { %755 = vmatprep.subr.bf16.mxu0 %v1279_v34  ;;  %711 = vmatpush1.bf16.msra.mxu1 %v1344_v51  ;;  %v1341_v34 = vld [vmem:[#allocation7 + $0x264] ss:$8 sps:$4 sm:$0xff]  }
  0x73   :  { %712 = vmatprep.subr.bf16.mxu1 %v1348_v52  ;;  %v1365_v51 = vld [vmem:[#allocation7 + $0x2a4] ss:$8 sps:$4 sm:$0xff]   ;;  %v1410_v52 = vld [vmem:[#allocation8 + $0x54] ss:$8 sps:$4 sm:$0xff]  }
  0x75   :  { %756 = vmatpush1.bf16.msra.mxu0 %v1281_v37  ;;  %v1339_v37 = vld [vmem:[#allocation7 + $0x260] ss:$8 sps:$4 sm:$0xff]  }
  0x76   :  { %757 = vmatprep.subr.bf16.mxu0 %v1282_v38  ;;  %713 = vmatpush1.bf16.msra.mxu1 %v1350_v57  ;;  %v1396_v38 = vld [vmem:[#allocation8 + $0x10] ss:$8 sps:$4 sm:$0xff]  }
  0x77   :  { %714 = vmatprep.subr.bf16.mxu1 %v1354_v58  ;;  %v1369_v57 = vld [vmem:[#allocation7 + $0x2b0] ss:$8 sps:$4 sm:$0xff]   ;;  %v1411_v58 = vld [vmem:[#allocation8 + $0x60] ss:$8 sps:$4 sm:$0xff]  }
  0x79   :  { %758 = vmatpush1.bf16.msra.mxu0 %v1284_v41  ;;  %v1345_v41 = vld [vmem:[#allocation7 + $0x270] ss:$8 sps:$4 sm:$0xff]  }
  0x7a   :  { %759 = vmatprep.subr.bf16.mxu0 %v1285_v42  ;;  %715 = vmatpush1.bf16.msra.mxu1 %v1356_v62  ;;  %v1399_v42 = vld [vmem:[#allocation8 + $0x20] ss:$8 sps:$4 sm:$0xff]   ;;  %v1414_v62 = vld [vmem:[#allocation8 + $0x70] ss:$8 sps:$4 sm:$0xff]  }
  0x7b   :  { %716 = vmatprep.subr.bf16.mxu1 %v1360_v63  ;;  %v1383_v63 = vld [vmem:[#allocation7 + $0x2d4] ss:$8 sps:$4 sm:$0xff]  }
  0x7d   :  { %760 = vmatpush1.bf16.msra.mxu0 %v1287_v45  ;;  %v1351_v45 = vld [vmem:[#allocation7 + $0x280] ss:$8 sps:$4 sm:$0xff]  }
  0x7e   :  { %761 = vmatprep.subr.bf16.mxu0 %v1288_v46  ;;  %717 = vmatpush1.bf16.msra.mxu1 %v1362_v3  ;;  %v1402_v46 = vld [vmem:[#allocation8 + $0x30] ss:$8 sps:$4 sm:$0xff]   ;;  %v1389_v3 = vld [vmem:[#allocation7 + $0x2e4] ss:$8 sps:$4 sm:$0xff]  }
  0x7f   :  { %718 = vmatprep.subr.bf16.mxu1 %v1366_v4  ;;  %v1422_v4 = vld [vmem:[#allocation8 + $0x94] ss:$8 sps:$4 sm:$0xff]  }
  0x81   :  { %762 = vmatpush1.bf16.msra.mxu0 %v1290_v49  ;;  %v1357_v49 = vld [vmem:[#allocation7 + $0x290] ss:$8 sps:$4 sm:$0xff]  }
  0x82   :  { %763 = vmatprep.subr.bf16.mxu0 %v1291_v50  ;;  %719 = vmatpush1.bf16.msra.mxu1 %v1368_v11  ;;  %v1405_v50 = vld [vmem:[#allocation8 + $0x40] ss:$8 sps:$4 sm:$0xff]   ;;  %v98_v11 = vsub.f32 %v86_v6, %v92_v7 }
  0x83   :  { %720 = vmatprep.subr.bf16.mxu1 %v1372_v14  ;;  %v1428_v14 = vld [vmem:[#allocation8 + $0xb4] ss:$8 sps:$4 sm:$0xff]  }
  0x84   :  { %v104_v15 = vpack.c.bf16 %v98_v11, %v98_v11 }
  0x85   :  { %764 = vmatpush1.bf16.msra.mxu0 %v1293_v53  ;;  %v1363_v53 = vld [vmem:[#allocation7 + $0x2a0] ss:$8 sps:$4 sm:$0xff]  }
  0x86   :  { %765 = vmatprep.subr.bf16.mxu0 %v1297_v54  ;;  %721 = vmatpush1.bf16.msra.mxu1 %v1374_v19  ;;  %v1408_v54 = vld [vmem:[#allocation8 + $0x50] ss:$8 sps:$4 sm:$0xff]   ;;  %v1434_v19 = vld [vmem:[#allocation8 + $0xd4] ss:$8 sps:$4 sm:$0xff]  }
  0x87   :  { %722 = vmatprep.subr.bf16.mxu1 %v1378_v20  ;;  %v1432_v20 = vld [vmem:[#allocation8 + $0xd0] ss:$8 sps:$4 sm:$0xff]  }
  0x89   :  { %766 = vmatpush1.bf16.msra.mxu0 %v1299_v59  ;;  %v1377_v59 = vld [vmem:[#allocation7 + $0x2c4] ss:$8 sps:$4 sm:$0xff]  }
  0x8a   :  { %776 = vmatprep.subr.bf16.mxu0 %v1305_v61  ;;  %723 = vmatpush1.bf16.msra.mxu1 %v1380_v23  ;;  %v1375_v61 = vld [vmem:[#allocation7 + $0x2c0] ss:$8 sps:$4 sm:$0xff]   ;;  %v1440_v23 = vld [vmem:[#allocation8 + $0xf4] ss:$8 sps:$4 sm:$0xff]  }
  0x8b   :  { %724 = vmatprep.subr.bf16.mxu1 %v1384_v26 }
  0x8c   :  { %768 = vmatmul.mubr.bf16.vlgmr.msra.gmra.mrb[0].mxu0 %v102_v1  ;;  %v1381_v1 = vld [vmem:[#allocation7 + $0x2d0] ss:$8 sps:$4 sm:$0xff]  }
  0x8d   :  { %777 = vmatpush1.bf16.msra.mxu0 %v1303_v0  ;;  %808 = vmatprep.mubr.bf16.mxu0 %v105_v17  ;;  %v1419_v0 = vld [vmem:[#allocation8 + $0x84] ss:$8 sps:$4 sm:$0xff]   ;;  %v1429_v17 = vld [vmem:[#allocation8 + $0xc0] ss:$8 sps:$4 sm:$0xff]  }
  0x8e   :  { %778 = vmatprep.subr.bf16.mxu0 %v1311_v2  ;;  %725 = vmatpush1.bf16.msra.mxu1 %v1386_v30  ;;  %v1417_v2 = vld [vmem:[#allocation8 + $0x80] ss:$8 sps:$4 sm:$0xff]  }
  0x8f   :  { %1027 = vmatprep.subr.bf16.mxu1 %v1395_v31 }
  0x91   :  { %779 = vmatpush1.bf16.msra.mxu0 %v1309_v8  ;;  %727 = vmatmul.mubr.bf16.vlgmr.msra.gmra.mrb[0].mxu1 %v100_v33  ;;  %v1420_v8 = vld [vmem:[#allocation8 + $0x90] ss:$8 sps:$4 sm:$0xff]  }
  0x92   :  { %780 = vmatprep.subr.bf16.mxu0 %v1317_v10  ;;  %1028 = vmatpush1.bf16.msra.mxu1 %v1393_v35  ;;  %v1425_v10 = vld [vmem:[#allocation8 + $0xa4] ss:$8 sps:$4 sm:$0xff]  }
  0x93   :  { %1029 = vmatprep.subr.bf16.mxu1 %v1398_v36 }
  0x95   :  { %781 = vmatpush1.bf16.msra.mxu0 %v1315_v16  ;;  %v1426_v16 = vld [vmem:[#allocation8 + $0xb0] ss:$8 sps:$4 sm:$0xff]  }
  0x96   :  { %782 = vmatprep.subr.bf16.mxu0 %v1323_v18  ;;  %1030 = vmatpush1.bf16.msra.mxu1 %v1396_v38  ;;  %v1431_v18 = vld [vmem:[#allocation8 + $0xc4] ss:$8 sps:$4 sm:$0xff]  }
  0x97   :  { %1031 = vmatprep.subr.bf16.mxu1 %v1401_v40 }
  0x99   :  { %783 = vmatpush1.bf16.msra.mxu0 %v1321_v21  ;;  %v1437_v21 = vld [vmem:[#allocation8 + $0xe4] ss:$8 sps:$4 sm:$0xff]  }
  0x9a   :  { %784 = vmatprep.subr.bf16.mxu0 %v1329_v22  ;;  %1032 = vmatpush1.bf16.msra.mxu1 %v1399_v42  ;;  %v1435_v22 = vld [vmem:[#allocation8 + $0xe0] ss:$8 sps:$4 sm:$0xff]  }
  0x9b   :  { %1033 = vmatprep.subr.bf16.mxu1 %v1404_v44 }
  0x9d   :  { %785 = vmatpush1.bf16.msra.mxu0 %v1327_v27 }
  0x9e   :  { %786 = vmatprep.subr.bf16.mxu0 %v1335_v29  ;;  %1034 = vmatpush1.bf16.msra.mxu1 %v1402_v46  ;;  %v204_v29 = vlaneseq }
  0x9f   :  { %1035 = vmatprep.subr.bf16.mxu1 %v1407_v48 }
  0xa0   :  { %v205_v30 = vshrl.u32 %v204_v29, 7 }
  0xa1   :  { %787 = vmatpush1.bf16.msra.mxu0 %v1333_v32  ;;  %v202_v32 = vld [vmem:[%s1652_s3] sm:$0x3] }
  0xa2   :  { %788 = vmatprep.subr.bf16.mxu0 %v1341_v34  ;;  %1036 = vmatpush1.bf16.msra.mxu1 %v1405_v50  ;;  %v206_v31 = vsub.s32 0, %v205_v30  ;;  %v210_v33 = vsub.s32 1, %v205_v30  ;;  %v855_v50 = vld [vmem:[%s1654_s5] sm:$0x3] }
  0xa3   :  { %1037 = vmatprep.subr.bf16.mxu1 %v1410_v52 }
  0xa4   :  { %v207_v34 = vrot.slane %v202_v32, %v206_v31  ;;  %v211_v35 = vrot.slane %v202_v32, %v210_v33  ;;  %v864_v52 = vrot.slane %v855_v50, %v210_v33 }
  0xa5   :  { %789 = vmatpush1.bf16.msra.mxu0 %v1339_v37 }
  0xa6   :  { %790 = vmatprep.subr.bf16.mxu0 %v1347_v39  ;;  %1038 = vmatpush1.bf16.msra.mxu1 %v1408_v54  ;;  %v1072_v54 = vld [vmem:[%s1655_s6] sm:$0x3] }
  0xa7   :  { %1039 = vmatprep.subr.bf16.mxu1 %v1413_v56 }
  0xa9   :  { %791 = vmatpush1.bf16.msra.mxu0 %v1345_v41 }
  0xaa   :  { %792 = vmatprep.subr.bf16.mxu0 %v1353_v43  ;;  %1040 = vmatpush1.bf16.msra.mxu1 %v1411_v58 }
  0xab   :  { %1041 = vmatprep.subr.bf16.mxu1 %v1416_v60 }
  0xad   :  { %793 = vmatpush1.bf16.msra.mxu0 %v1351_v45 }
  0xae   :  { %794 = vmatprep.subr.bf16.mxu0 %v1359_v47  ;;  %1042 = vmatpush1.bf16.msra.mxu1 %v1414_v62 }
  0xaf   :  { %1043 = vmatprep.subr.bf16.mxu1 %v1419_v0 }
  0xb1   :  { %795 = vmatpush1.bf16.msra.mxu0 %v1357_v49 }
  0xb2   :  { %796 = vmatprep.subr.bf16.mxu0 %v1365_v51  ;;  %1044 = vmatpush1.bf16.msra.mxu1 %v1417_v2  ;;  %v860_v51 = vrot.slane %v855_v50, %v206_v31 }
  0xb3   :  { %1045 = vmatprep.subr.bf16.mxu1 %v1422_v4 }
  0xb5   :  { %797 = vmatpush1.bf16.msra.mxu0 %v1363_v53 }
  0xb6   :  { %798 = vmatprep.subr.bf16.mxu0 %v1371_v55  ;;  %1046 = vmatpush1.bf16.msra.mxu1 %v1420_v8 }
  0xb7   :  { %1047 = vmatprep.subr.bf16.mxu1 %v1425_v10 }
  0xb9   :  { %799 = vmatpush1.bf16.msra.mxu0 %v1369_v57 }
  0xba   :  { %800 = vmatprep.subr.bf16.mxu0 %v1377_v59  ;;  %1048 = vmatpush1.bf16.msra.mxu1 %v1423_v13 }
  0xbb   :  { %1049 = vmatprep.subr.bf16.mxu1 %v1428_v14 }
  0xbd   :  { %801 = vmatpush1.bf16.msra.mxu0 %v1375_v61  ;;  %v1077_v61 = vrot.slane %v1072_v54, %v206_v31 }
  0xbe   :  { %802 = vmatprep.subr.bf16.mxu0 %v1383_v63  ;;  %1050 = vmatpush1.bf16.msra.mxu1 %v1426_v16  ;;  %v1081_v63 = vrot.slane %v1072_v54, %v210_v33 }
  0xbf   :  { %1051 = vmatprep.subr.bf16.mxu1 %v1431_v18 }
  0xc1   :  { %803 = vmatpush1.bf16.msra.mxu0 %v1381_v1 }
  0xc2   :  { %804 = vmatprep.subr.bf16.mxu0 %v1389_v3  ;;  %1052 = vmatpush1.bf16.msra.mxu1 %v1429_v17 }
  0xc3   :  { %1053 = vmatprep.subr.bf16.mxu1 %v1434_v19 }
  0xc5   :  { %805 = vmatpush1.bf16.msra.mxu0 %v1387_v5  ;;  %v1234_v5 = vld [vmem:[#allocation2] ss:$0 sm:$0xff] }
  0xc6   :  { %806 = vmatprep.subr.bf16.mxu0 %v1392_v9  ;;  %1054 = vmatpush1.bf16.msra.mxu1 %v1432_v20 }
  0xc7   :  { %1055 = vmatprep.subr.bf16.mxu1 %v1437_v21 }
  0xc9   :  { %807 = vmatpush1.bf16.msra.mxu0 %v1390_v12 }
  0xca   :  { %1056 = vmatpush1.bf16.msra.mxu1 %v1435_v22 }
  0xcb   :  { %1057 = vmatprep.subr.bf16.mxu1 %v1440_v23 }
  0xcc   :  { %809 = vmatmul.mubr.bf16.vlgmr.msra.gmra.mrb[0].mxu0 %v104_v15 }
  0xce   :  { %1058 = vmatpush1.bf16.msra.mxu1 %v1438_v24 }
 0x164   :  { %v728_v25 = vpop.f32.mrb[0].mxu1 }
 0x165   :  { %v730_v26 = vpop.f32.mrb[1].mxu1  ;;  %v729_v36 = vadd.f32 %v728_v25, %v207_v34 }
 0x166   :  { %v732_v27 = vpop.f32.mrb[2].mxu1  ;;  %v731_v37 = vadd.f32 %v730_v26, %v211_v35 }
 0x167   :  { %v733_v28 = vpop.f32.mrb[3].mxu1 }
 0x19f   :  { %v810_v38 = vpop.f32.mrb[0].mxu0 }
 0x1a0   :  { %v1236_v39 = vadd.f32 %v810_v38, %v729_v36  ;;  %v812_v40 = vpop.f32.mrb[1].mxu0 }
 0x1a1   :  { %v1238_v41 = vadd.f32 %v812_v40, %v731_v37  ;;  %v814_v42 = vpop.f32.mrb[2].mxu0 }
 0x1a2   :  { %v817_v43 = vmul.f32 0.01, %v1236_v39  ;;  %v815_v44 = vpop.f32.mrb[3].mxu0 }
 0x1a3   :  { %v818_v45 = vmul.f32 0.01, %v1238_v41 }
 0x1a4   :  { %v819_v46 = vmax.f32 %v1236_v39, %v817_v43 }
 0x1a5   :  { %v820_v47 = vmax.f32 %v1238_v41, %v818_v45 }
 0x1a6   :  { %v821_v49 = vpack.c.bf16 %v819_v46, %v819_v46 }
 0x1a7   :  { %v822_v48 = vpack.c.bf16 %v820_v47, %v820_v47 }
 0x1a9   :  { %1059 = vmatprep.mubr.bf16.mxu1 %v822_v48 }
 0x1aa   :  { %1060 = vmatmul.mubr.bf16.vlgmr.msra.gmra.mrb[4].mxu1 %v821_v49 }
 0x27d   :  { %v1061_v53 = vpop.f32.mrb[4].mxu1 }
 0x27e   :  { %v1062_v55 = vadd.f32 %v1061_v53, %v860_v51  ;;  %v1063_v56 = vpop.f32.mrb[5].mxu1 }
 0x27f   :  { %v1064_v57 = vadd.f32 %v1063_v56, %v864_v52  ;;  %v1065_v58 = vpop.f32.mrb[6].mxu1 }
 0x280   :  { %v1068_v59 = vmul.f32 0.01, %v1062_v55  ;;  %v1066_v60 = vpop.f32.mrb[7].mxu1 }
 0x281   :  { %v1069_v62 = vmul.f32 0.01, %v1064_v57 }
 0x282   :  { %v1070_v0 = vmax.f32 %v1062_v55, %v1068_v59 }
 0x283   :  { %v1071_v1 = vmax.f32 %v1064_v57, %v1069_v62 }
 0x284   :  { %v1084_v2 = vmul.f32 %v1077_v61, %v1070_v0 }
 0x285   :  { %v1085_v3 = vmul.f32 %v1081_v63, %v1071_v1 }
 0x287   :  { %v1086_v4 = vadd.f32 %v1085_v3, %v1084_v2 }
 0x289   :  { %1087 = vadd.xlane.f32.xlu0 %v1086_v4 }
 0x316   :  { %v1088_v6 = vpop.xlane.xlu0 %1087 }
 0x317   :  { %v1096_v7 = vadd.f32 %v1234_v5, %v1088_v6 }
 0x319   :  { %1098 = vst.msk [vmem:[%s1657_s8] sm:$0xff] %vm1097_vm0, %v1096_v7 }
 0x31a   :  { %1103 = vsyncpa [#allocation4], 1 }
 0x31b   :  { %1104 = vsyncpa [#allocation6], 1 }
 0x31c   :  { %1105 = vsyncpa [#allocation9], 1 }

</bundles_post_ra>
